<compile_context>
chip_gen: v6e
topology: v6e:2x2x1
jax: 0.10.0
libtpu: 0.0.40
codegen_flags: <defaults>
</compile_context>

<pallas_src>
import functools
import numpy as np
import jax
import jax.numpy as jnp
from jax import lax
from jax.experimental import pallas as pl
from jax.experimental.pallas import tpu as pltpu

BN_EPS = 1e-5
BATCH_TILE = 8          # f32 sublane quantum; batch is zero-padded up to a multiple of this


def _downselect_stride5(m, n_out):
    """(rows, 5*n_out) -> (rows, n_out): pick lanes 0, 5, 10, ... exactly.

    Implemented as a selection matmul on the MXU. The operand is split into a
    bf16-representable high part plus residual so the pick is exact regardless of
    how the compiler lowers the f32 matmul (single- or multi-pass)."""
    w = 5 * n_out
    rows_iota = lax.broadcasted_iota(jnp.int32, (w, n_out), 0)
    cols_iota = lax.broadcasted_iota(jnp.int32, (w, n_out), 1)
    sel = (rows_iota == 5 * cols_iota).astype(jnp.float32)
    hi = m.astype(jnp.bfloat16).astype(jnp.float32)
    lo = m - hi
    return (jnp.dot(hi, sel, preferred_element_type=jnp.float32)
            + jnp.dot(lo, sel, preferred_element_type=jnp.float32))


def _make_kernel(TB, L, K1, C1, C2, P1, P2):
    """Fused KBS3 forward kernel for one batch tile of TB rows (static shapes)."""
    W1 = 5 * P1
    W2 = 5 * P2
    R1 = C1 * TB          # conv1 slab rows (channel-stacked)
    R2 = C2 * TB          # conv2 slab rows

    def kernel(x_ref, w1c_ref, s1c_ref, t1c_ref,
               w2c_ref, s2c_ref, t2c_ref,
               w4_ref, b4_ref, w5_ref, b5_ref, o_ref):
        f32 = jnp.float32
        x = x_ref[...]                                    # (TB, L + 2*(K1//2)), zero-padded
        w1c = w1c_ref[...]                                # (R1, K1)
        w2c = w2c_ref[...]                                # (R2, C1*3)

        # ---- conv1 + folded BN1 + ReLU, all channels stacked on sublanes ----
        xt = jnp.concatenate([x] * C1, axis=0)            # (R1, Lpad); row = c*TB + b
        acc1 = jnp.zeros((R1, L), f32)
        for t in range(K1):                               # K1 hoisted shifted views total
            acc1 = acc1 + w1c[:, t:t + 1] * xt[:, t:t + L]
        y1 = jnp.maximum(acc1 * s1c_ref[...] + t1c_ref[...], 0.0)

        # ---- MaxPool1d(5): 4 shifted maxima + one stride-5 downselect (MXU) ----
        y1e = jnp.concatenate([y1, jnp.zeros((R1, 4), f32)], axis=1)
        m1 = y1e[:, 0:W1]
        for p in range(1, 5):
            m1 = jnp.maximum(m1, y1e[:, p:p + W1])
        pooled1 = _downselect_stride5(m1, P1)             # (R1, P1)

        # ---- conv2 (k=3, pad=1) + folded BN2 + ReLU, channel-stacked ----
        zc = jnp.zeros((R1, 1), f32)
        p1p = jnp.concatenate([zc, pooled1, zc], axis=1)  # (R1, P1+2): one concat total
        acc2 = jnp.zeros((R2, P1), f32)
        for ic in range(C1):
            blk = jnp.concatenate([p1p[ic * TB:(ic + 1) * TB, :]] * C2, axis=0)  # (R2, P1+2)
            for t in range(3):
                acc2 = acc2 + w2c[:, ic * 3 + t:ic * 3 + t + 1] * blk[:, t:t + P1]
        y2 = jnp.maximum(acc2 * s2c_ref[...] + t2c_ref[...], 0.0)

        # ---- MaxPool1d(5) again ----
        y2e = jnp.concatenate([y2, jnp.zeros((R2, 4), f32)], axis=1)
        m2 = y2e[:, 0:W2]
        for p in range(1, 5):
            m2 = jnp.maximum(m2, y2e[:, p:p + W2])
        pooled2 = _downselect_stride5(m2, P2)             # (R2, P2)

        # ---- flatten (channel-major == torch .view(B,-1)) + lane-dense FC head ----
        feat = jnp.concatenate(
            [pooled2[oc * TB:(oc + 1) * TB, :] for oc in range(C2)], axis=1)  # (TB, C2*P2)
        # TODO(synk): Dropout(p=0.5) layers are inference-mode identity here (no RNG masking).
        h = jnp.dot(feat, w4_ref[...], preferred_element_type=f32) + b4_ref[...]
        h = jnp.maximum(h, 0.0)
        o_ref[...] = jnp.dot(h, w5_ref[...], preferred_element_type=f32) + b5_ref[...]

    return kernel


def kbs3_forward(x, params, *, input_shape, out_shape, kernel_size, channel_size):
    B = x.shape[0]
    L = input_shape
    K1 = kernel_size
    C1 = channel_size
    C2 = 2 * C1
    P1 = L // 5
    P2 = P1 // 5
    pad1 = K1 // 2
    Lpad = L + 2 * pad1

    TB = BATCH_TILE
    Bp = ((B + TB - 1) // TB) * TB

    HID = params['w4'].shape[1]                       # 300
    Hpad = ((HID + 127) // 128) * 128                 # 384
    OUTpad = ((out_shape + 127) // 128) * 128         # >= 128 (lane-dense output)

    x2 = x.reshape(B, L).astype(jnp.float32)
    x_pad = jnp.pad(x2, ((0, Bp - B), (pad1, pad1)))  # batch pad + conv1 'same' pad

    # Fold conv bias + eval-mode BatchNorm into per-channel scale/shift, expanded to
    # per-row columns matching the channel-stacked (C*TB, length) slab layout.
    s1 = params['g1'] / jnp.sqrt(params['v1'] + BN_EPS)
    t1 = s1 * (params['b1'] - params['m1']) + params['be1']
    s2 = params['g2'] / jnp.sqrt(params['v2'] + BN_EPS)
    t2 = s2 * (params['b2'] - params['m2']) + params['be2']

    rep = lambda v: jnp.repeat(jnp.asarray(v, jnp.float32), TB, axis=0)
    w1c = rep(params['w1'])                           # (C1*TB, K1)
    s1c = rep(s1.reshape(C1, 1))
    t1c = rep(t1.reshape(C1, 1))
    w2c = rep(params['w2'].reshape(C2, C1 * 3))       # (C2*TB, C1*3)
    s2c = rep(s2.reshape(C2, 1))
    t2c = rep(t2.reshape(C2, 1))

    # Lane-dense FC weights: hidden HID -> Hpad, logits out_shape -> OUTpad (zero pad).
    w4 = jnp.pad(jnp.asarray(params['w4'], jnp.float32), ((0, 0), (0, Hpad - HID)))
    b4 = jnp.pad(jnp.asarray(params['b4'], jnp.float32), ((0, Hpad - HID),)).reshape(1, Hpad)
    w5 = jnp.pad(jnp.asarray(params['w5'], jnp.float32),
                 ((0, Hpad - HID), (0, OUTpad - out_shape)))
    b5 = jnp.pad(jnp.asarray(params['b5'], jnp.float32),
                 ((0, OUTpad - out_shape),)).reshape(1, OUTpad)

    kernel = _make_kernel(TB, L, K1, C1, C2, P1, P2)

    def _full(a):  # grid-invariant VMEM-resident parameter
        return pl.BlockSpec(a.shape, lambda i: (0, 0))

    out_full = pl.pallas_call(
        kernel,
        out_shape=jax.ShapeDtypeStruct((Bp, OUTpad), jnp.float32),
        grid=(Bp // TB,),
        in_specs=[pl.BlockSpec((TB, Lpad), lambda i: (i, 0)),
                  _full(w1c), _full(s1c), _full(t1c),
                  _full(w2c), _full(s2c), _full(t2c),
                  _full(w4), _full(b4), _full(w5), _full(b5)],
        out_specs=pl.BlockSpec((TB, OUTpad), lambda i: (i, 0)),
        compiler_params=pltpu.CompilerParams(
            dimension_semantics=("parallel",),
            vmem_limit_bytes=32 * 1024 * 1024),
    )(x_pad, w1c, s1c, t1c, w2c, s2c, t2c, w4, b4, w5, b5)

    return out_full[:B, :out_shape]


def reference_forward(x, params, *, input_shape, out_shape, kernel_size, channel_size):
    """Pure NumPy reference mirroring the PyTorch forward (eval mode)."""
    p = {k: np.asarray(v, np.float32) for k, v in params.items()}
    x = np.asarray(x, np.float32).reshape(x.shape[0], input_shape)
    B, L, K1 = x.shape[0], input_shape, kernel_size
    C1, C2 = channel_size, 2 * channel_size
    pad1 = K1 // 2
    xp = np.pad(x, ((0, 0), (pad1, pad1)))

    y1 = np.zeros((B, C1, L), np.float32)
    for c in range(C1):
        for t in range(K1):
            y1[:, c, :] += p['w1'][c, t] * xp[:, t:t + L]
        y1[:, c, :] += p['b1'][c]
    s1 = p['g1'] / np.sqrt(p['v1'] + BN_EPS)
    t1 = p['be1'] - p['m1'] * s1
    y1 = np.maximum(y1 * s1[None, :, None] + t1[None, :, None], 0.0)
    P1 = L // 5
    y1 = y1[:, :, :P1 * 5].reshape(B, C1, P1, 5).max(-1)

    y1p = np.pad(y1, ((0, 0), (0, 0), (1, 1)))
    y2 = np.zeros((B, C2, P1), np.float32)
    for oc in range(C2):
        for ic in range(C1):
            for t in range(3):
                y2[:, oc, :] += p['w2'][oc, ic, t] * y1p[:, ic, t:t + P1]
        y2[:, oc, :] += p['b2'][oc]
    s2 = p['g2'] / np.sqrt(p['v2'] + BN_EPS)
    t2 = p['be2'] - p['m2'] * s2
    y2 = np.maximum(y2 * s2[None, :, None] + t2[None, :, None], 0.0)
    P2 = P1 // 5
    y2 = y2[:, :, :P2 * 5].reshape(B, C2, P2, 5).max(-1)

    feat = y2.reshape(B, -1)
    h = np.maximum(feat @ p['w4'] + p['b4'], 0.0)
    return h @ p['w5'] + p['b5']


def init_params(key, *, input_shape, out_shape, kernel_size, channel_size):
    C1, C2, K1 = channel_size, 2 * channel_size, kernel_size
    P2 = (input_shape // 5) // 5
    fc_in = C2 * P2
    ks = jax.random.split(key, 16)
    n = lambda k, s, sc=0.1: sc * jax.random.normal(k, s, jnp.float32)
    u = lambda k, s: jax.random.uniform(k, s, jnp.float32, 0.5, 1.5)
    return {
        'w1': n(ks[0], (C1, K1), 0.3), 'b1': n(ks[1], (C1,)),
        'g1': u(ks[2], (C1,)), 'be1': n(ks[3], (C1,)),
        'm1': n(ks[4], (C1,)), 'v1': u(ks[5], (C1,)),
        'w2': n(ks[6], (C2, C1, 3), 0.3), 'b2': n(ks[7], (C2,)),
        'g2': u(ks[8], (C2,)), 'be2': n(ks[9], (C2,)),
        'm2': n(ks[10], (C2,)), 'v2': u(ks[11], (C2,)),
        'w4': n(ks[12], (fc_in, 300), 0.2), 'b4': n(ks[13], (300,)),
        'w5': n(ks[14], (300, out_shape), 0.2), 'b5': n(ks[15], (out_shape,)),
    }


if __name__ == "__main__":
    # Small config consistent with the module: input_shape divisible by 25, odd kernel.
    cfg = dict(input_shape=50, out_shape=3, kernel_size=5, channel_size=4)

    key = jax.random.PRNGKey(0)
    kx, kp, kx2 = jax.random.split(key, 3)
    params = init_params(kp, **cfg)
    fwd = jax.jit(functools.partial(kbs3_forward, **cfg))

    # Single batch tile (B=2 -> padded to 8 rows, grid=(1,)).
    x = jax.random.normal(kx, (2, cfg['input_shape']), jnp.float32)
    out = jax.block_until_ready(fwd(x, params))
    ref = reference_forward(x, params, **cfg)
    np.testing.assert_allclose(np.asarray(out), ref, rtol=1e-3, atol=1e-2)

    # Multiple grid steps over the parallel batch axis (B=19 -> 3 tiles of 8).
    x2 = jax.random.normal(kx2, (19, cfg['input_shape']), jnp.float32)
    out2 = jax.block_until_ready(fwd(x2, params))
    ref2 = reference_forward(x2, params, **cfg)
    np.testing.assert_allclose(np.asarray(out2), ref2, rtol=1e-3, atol=1e-2)

    print("KERNEL_OK")
</pallas_src>

<mosaic_0001>
module attributes {stable_mosaic.version = 11 : i64} {
  func.func @kernel(%arg0: i32, %arg1: memref<8x54xf32, #tpu.memory_space<vmem>>, %arg2: memref<32x5xf32, #tpu.memory_space<vmem>>, %arg3: memref<32x1xf32, #tpu.memory_space<vmem>>, %arg4: memref<32x1xf32, #tpu.memory_space<vmem>>, %arg5: memref<64x12xf32, #tpu.memory_space<vmem>>, %arg6: memref<64x1xf32, #tpu.memory_space<vmem>>, %arg7: memref<64x1xf32, #tpu.memory_space<vmem>>, %arg8: memref<16x384xf32, #tpu.memory_space<vmem>>, %arg9: memref<1x384xf32, #tpu.memory_space<vmem>>, %arg10: memref<384x128xf32, #tpu.memory_space<vmem>>, %arg11: memref<1x128xf32, #tpu.memory_space<vmem>>, %arg12: memref<8x128xf32, #tpu.memory_space<vmem>>) attributes {dimension_semantics = [#tpu.dimension_semantics<parallel>], iteration_bounds = array<i64: 1>, scalar_prefetch = 0 : i64, scratch_operands = 0 : i64, tpu.core_type = #tpu.core_type<tc>, window_params = [{transform_indices = @transform_0, window_bounds = array<i64: 8, 54>}, {pipeline_mode = #tpu.pipeline_mode<synchronous>, transform_indices = @transform_1, window_bounds = array<i64: 32, 5>}, {pipeline_mode = #tpu.pipeline_mode<synchronous>, transform_indices = @transform_2, window_bounds = array<i64: 32, 1>}, {pipeline_mode = #tpu.pipeline_mode<synchronous>, transform_indices = @transform_3, window_bounds = array<i64: 32, 1>}, {pipeline_mode = #tpu.pipeline_mode<synchronous>, transform_indices = @transform_4, window_bounds = array<i64: 64, 12>}, {pipeline_mode = #tpu.pipeline_mode<synchronous>, transform_indices = @transform_5, window_bounds = array<i64: 64, 1>}, {pipeline_mode = #tpu.pipeline_mode<synchronous>, transform_indices = @transform_6, window_bounds = array<i64: 64, 1>}, {pipeline_mode = #tpu.pipeline_mode<synchronous>, transform_indices = @transform_7, window_bounds = array<i64: 16, 384>}, {pipeline_mode = #tpu.pipeline_mode<synchronous>, transform_indices = @transform_8, window_bounds = array<i64: 1, 384>}, {pipeline_mode = #tpu.pipeline_mode<synchronous>, transform_indices = @transform_9, window_bounds = array<i64: 384, 128>}, {pipeline_mode = #tpu.pipeline_mode<synchronous>, transform_indices = @transform_10, window_bounds = array<i64: 1, 128>}, {transform_indices = @transform_11, window_bounds = array<i64: 8, 128>}]} {
    %c0 = arith.constant 0 : index
    %c0_0 = arith.constant 0 : index
    %0 = vector.load %arg1[%c0, %c0_0] : memref<8x54xf32, #tpu.memory_space<vmem>>, vector<8x54xf32>
    %c0_1 = arith.constant 0 : index
    %c0_2 = arith.constant 0 : index
    %1 = vector.load %arg2[%c0_1, %c0_2] : memref<32x5xf32, #tpu.memory_space<vmem>>, vector<32x5xf32>
    %c0_3 = arith.constant 0 : index
    %c0_4 = arith.constant 0 : index
    %2 = vector.load %arg5[%c0_3, %c0_4] : memref<64x12xf32, #tpu.memory_space<vmem>>, vector<64x12xf32>
    %3 = tpu.concatenate %0, %0, %0, %0 in 0 : vector<8x54xf32>, vector<8x54xf32>, vector<8x54xf32>, vector<8x54xf32> -> vector<32x54xf32>
    %cst = arith.constant 0.000000e+00 : f32
    %4 = vector.broadcast %cst : f32 to vector<32x50xf32>
    %5 = vector.extract_strided_slice %1 {offsets = [0, 0], sizes = [32, 1], strides = [1, 1]} : vector<32x5xf32> to vector<32x1xf32>
    %6 = vector.extract_strided_slice %3 {offsets = [0, 0], sizes = [32, 50], strides = [1, 1]} : vector<32x54xf32> to vector<32x50xf32>
    %7 = vector.broadcast %5 : vector<32x1xf32> to vector<32x50xf32>
    %8 = arith.mulf %7, %6 : vector<32x50xf32>
    %9 = arith.addf %4, %8 : vector<32x50xf32>
    %10 = vector.extract_strided_slice %1 {offsets = [0, 1], sizes = [32, 1], strides = [1, 1]} : vector<32x5xf32> to vector<32x1xf32>
    %11 = vector.extract_strided_slice %3 {offsets = [0, 1], sizes = [32, 50], strides = [1, 1]} : vector<32x54xf32> to vector<32x50xf32>
    %12 = vector.broadcast %10 : vector<32x1xf32> to vector<32x50xf32>
    %13 = arith.mulf %12, %11 : vector<32x50xf32>
    %14 = arith.addf %9, %13 : vector<32x50xf32>
    %15 = vector.extract_strided_slice %1 {offsets = [0, 2], sizes = [32, 1], strides = [1, 1]} : vector<32x5xf32> to vector<32x1xf32>
    %16 = vector.extract_strided_slice %3 {offsets = [0, 2], sizes = [32, 50], strides = [1, 1]} : vector<32x54xf32> to vector<32x50xf32>
    %17 = vector.broadcast %15 : vector<32x1xf32> to vector<32x50xf32>
    %18 = arith.mulf %17, %16 : vector<32x50xf32>
    %19 = arith.addf %14, %18 : vector<32x50xf32>
    %20 = vector.extract_strided_slice %1 {offsets = [0, 3], sizes = [32, 1], strides = [1, 1]} : vector<32x5xf32> to vector<32x1xf32>
    %21 = vector.extract_strided_slice %3 {offsets = [0, 3], sizes = [32, 50], strides = [1, 1]} : vector<32x54xf32> to vector<32x50xf32>
    %22 = vector.broadcast %20 : vector<32x1xf32> to vector<32x50xf32>
    %23 = arith.mulf %22, %21 : vector<32x50xf32>
    %24 = arith.addf %19, %23 : vector<32x50xf32>
    %25 = vector.extract_strided_slice %1 {offsets = [0, 4], sizes = [32, 1], strides = [1, 1]} : vector<32x5xf32> to vector<32x1xf32>
    %26 = vector.extract_strided_slice %3 {offsets = [0, 4], sizes = [32, 50], strides = [1, 1]} : vector<32x54xf32> to vector<32x50xf32>
    %27 = vector.broadcast %25 : vector<32x1xf32> to vector<32x50xf32>
    %28 = arith.mulf %27, %26 : vector<32x50xf32>
    %29 = arith.addf %24, %28 : vector<32x50xf32>
    %c0_5 = arith.constant 0 : index
    %c0_6 = arith.constant 0 : index
    %30 = vector.load %arg3[%c0_5, %c0_6] : memref<32x1xf32, #tpu.memory_space<vmem>>, vector<32x1xf32>
    %31 = vector.broadcast %30 : vector<32x1xf32> to vector<32x50xf32>
    %32 = arith.mulf %29, %31 : vector<32x50xf32>
    %c0_7 = arith.constant 0 : index
    %c0_8 = arith.constant 0 : index
    %33 = vector.load %arg4[%c0_7, %c0_8] : memref<32x1xf32, #tpu.memory_space<vmem>>, vector<32x1xf32>
    %34 = vector.broadcast %33 : vector<32x1xf32> to vector<32x50xf32>
    %35 = arith.addf %32, %34 : vector<32x50xf32>
    %cst_9 = arith.constant 0.000000e+00 : f32
    %36 = vector.broadcast %cst_9 : f32 to vector<32x50xf32>
    %37 = arith.maximumf %35, %36 : vector<32x50xf32>
    %cst_10 = arith.constant 0.000000e+00 : f32
    %38 = vector.broadcast %cst_10 : f32 to vector<32x4xf32>
    %39 = tpu.concatenate %37, %38 in 1 : vector<32x50xf32>, vector<32x4xf32> -> vector<32x54xf32>
    %40 = vector.extract_strided_slice %39 {offsets = [0, 0], sizes = [32, 50], strides = [1, 1]} : vector<32x54xf32> to vector<32x50xf32>
    %41 = vector.extract_strided_slice %39 {offsets = [0, 1], sizes = [32, 50], strides = [1, 1]} : vector<32x54xf32> to vector<32x50xf32>
    %42 = arith.maximumf %40, %41 : vector<32x50xf32>
    %43 = vector.extract_strided_slice %39 {offsets = [0, 2], sizes = [32, 50], strides = [1, 1]} : vector<32x54xf32> to vector<32x50xf32>
    %44 = arith.maximumf %42, %43 : vector<32x50xf32>
    %45 = vector.extract_strided_slice %39 {offsets = [0, 3], sizes = [32, 50], strides = [1, 1]} : vector<32x54xf32> to vector<32x50xf32>
    %46 = arith.maximumf %44, %45 : vector<32x50xf32>
    %47 = vector.extract_strided_slice %39 {offsets = [0, 4], sizes = [32, 50], strides = [1, 1]} : vector<32x54xf32> to vector<32x50xf32>
    %48 = arith.maximumf %46, %47 : vector<32x50xf32>
    %49 = tpu.iota {dimensions = array<i32: 0>} : vector<50x10xi32>
    %50 = tpu.iota {dimensions = array<i32: 1>} : vector<50x10xi32>
    %c5_i32 = arith.constant 5 : i32
    %51 = vector.broadcast %c5_i32 : i32 to vector<50x10xi32>
    %52 = arith.muli %51, %50 : vector<50x10xi32>
    %53 = arith.cmpi eq, %49, %52 : vector<50x10xi32>
    %54 = arith.extui %53 : vector<50x10xi1> to vector<50x10xi32>
    %55 = arith.sitofp %54 : vector<50x10xi32> to vector<50x10xf32>
    %56 = arith.truncf %48 : vector<32x50xf32> to vector<32x50xbf16>
    %57 = arith.extf %56 : vector<32x50xbf16> to vector<32x50xf32>
    %58 = arith.subf %48, %57 : vector<32x50xf32>
    %cst_11 = arith.constant dense<0.000000e+00> : vector<32x10xf32>
    %59 = tpu.matmul %57, %55, %cst_11 {dimension_numbers = #tpu.dot_dimension_numbers<[1], [0], [0], [1], [0, 0, 1, 1], [], []>} : vector<32x50xf32>, vector<50x10xf32>, vector<32x10xf32> -> vector<32x10xf32>
    %cst_12 = arith.constant dense<0.000000e+00> : vector<32x10xf32>
    %60 = tpu.matmul %58, %55, %cst_12 {dimension_numbers = #tpu.dot_dimension_numbers<[1], [0], [0], [1], [0, 0, 1, 1], [], []>} : vector<32x50xf32>, vector<50x10xf32>, vector<32x10xf32> -> vector<32x10xf32>
    %61 = arith.addf %59, %60 : vector<32x10xf32>
    %cst_13 = arith.constant 0.000000e+00 : f32
    %62 = vector.broadcast %cst_13 : f32 to vector<32x1xf32>
    %63 = tpu.concatenate %62, %61, %62 in 1 : vector<32x1xf32>, vector<32x10xf32>, vector<32x1xf32> -> vector<32x12xf32>
    %cst_14 = arith.constant 0.000000e+00 : f32
    %64 = vector.broadcast %cst_14 : f32 to vector<64x10xf32>
    %65 = vector.extract_strided_slice %63 {offsets = [0, 0], sizes = [8, 12], strides = [1, 1]} : vector<32x12xf32> to vector<8x12xf32>
    %66 = tpu.concatenate %65, %65, %65, %65, %65, %65, %65, %65 in 0 : vector<8x12xf32>, vector<8x12xf32>, vector<8x12xf32>, vector<8x12xf32>, vector<8x12xf32>, vector<8x12xf32>, vector<8x12xf32>, vector<8x12xf32> -> vector<64x12xf32>
    %67 = vector.extract_strided_slice %2 {offsets = [0, 0], sizes = [64, 1], strides = [1, 1]} : vector<64x12xf32> to vector<64x1xf32>
    %68 = vector.extract_strided_slice %66 {offsets = [0, 0], sizes = [64, 10], strides = [1, 1]} : vector<64x12xf32> to vector<64x10xf32>
    %69 = vector.broadcast %67 : vector<64x1xf32> to vector<64x10xf32>
    %70 = arith.mulf %69, %68 : vector<64x10xf32>
    %71 = arith.addf %64, %70 : vector<64x10xf32>
    %72 = vector.extract_strided_slice %2 {offsets = [0, 1], sizes = [64, 1], strides = [1, 1]} : vector<64x12xf32> to vector<64x1xf32>
    %73 = vector.extract_strided_slice %66 {offsets = [0, 1], sizes = [64, 10], strides = [1, 1]} : vector<64x12xf32> to vector<64x10xf32>
    %74 = vector.broadcast %72 : vector<64x1xf32> to vector<64x10xf32>
    %75 = arith.mulf %74, %73 : vector<64x10xf32>
    %76 = arith.addf %71, %75 : vector<64x10xf32>
    %77 = vector.extract_strided_slice %2 {offsets = [0, 2], sizes = [64, 1], strides = [1, 1]} : vector<64x12xf32> to vector<64x1xf32>
    %78 = vector.extract_strided_slice %66 {offsets = [0, 2], sizes = [64, 10], strides = [1, 1]} : vector<64x12xf32> to vector<64x10xf32>
    %79 = vector.broadcast %77 : vector<64x1xf32> to vector<64x10xf32>
    %80 = arith.mulf %79, %78 : vector<64x10xf32>
    %81 = arith.addf %76, %80 : vector<64x10xf32>
    %82 = vector.extract_strided_slice %63 {offsets = [8, 0], sizes = [8, 12], strides = [1, 1]} : vector<32x12xf32> to vector<8x12xf32>
    %83 = tpu.concatenate %82, %82, %82, %82, %82, %82, %82, %82 in 0 : vector<8x12xf32>, vector<8x12xf32>, vector<8x12xf32>, vector<8x12xf32>, vector<8x12xf32>, vector<8x12xf32>, vector<8x12xf32>, vector<8x12xf32> -> vector<64x12xf32>
    %84 = vector.extract_strided_slice %2 {offsets = [0, 3], sizes = [64, 1], strides = [1, 1]} : vector<64x12xf32> to vector<64x1xf32>
    %85 = vector.extract_strided_slice %83 {offsets = [0, 0], sizes = [64, 10], strides = [1, 1]} : vector<64x12xf32> to vector<64x10xf32>
    %86 = vector.broadcast %84 : vector<64x1xf32> to vector<64x10xf32>
    %87 = arith.mulf %86, %85 : vector<64x10xf32>
    %88 = arith.addf %81, %87 : vector<64x10xf32>
    %89 = vector.extract_strided_slice %2 {offsets = [0, 4], sizes = [64, 1], strides = [1, 1]} : vector<64x12xf32> to vector<64x1xf32>
    %90 = vector.extract_strided_slice %83 {offsets = [0, 1], sizes = [64, 10], strides = [1, 1]} : vector<64x12xf32> to vector<64x10xf32>
    %91 = vector.broadcast %89 : vector<64x1xf32> to vector<64x10xf32>
    %92 = arith.mulf %91, %90 : vector<64x10xf32>
    %93 = arith.addf %88, %92 : vector<64x10xf32>
    %94 = vector.extract_strided_slice %2 {offsets = [0, 5], sizes = [64, 1], strides = [1, 1]} : vector<64x12xf32> to vector<64x1xf32>
    %95 = vector.extract_strided_slice %83 {offsets = [0, 2], sizes = [64, 10], strides = [1, 1]} : vector<64x12xf32> to vector<64x10xf32>
    %96 = vector.broadcast %94 : vector<64x1xf32> to vector<64x10xf32>
    %97 = arith.mulf %96, %95 : vector<64x10xf32>
    %98 = arith.addf %93, %97 : vector<64x10xf32>
    %99 = vector.extract_strided_slice %63 {offsets = [16, 0], sizes = [8, 12], strides = [1, 1]} : vector<32x12xf32> to vector<8x12xf32>
    %100 = tpu.concatenate %99, %99, %99, %99, %99, %99, %99, %99 in 0 : vector<8x12xf32>, vector<8x12xf32>, vector<8x12xf32>, vector<8x12xf32>, vector<8x12xf32>, vector<8x12xf32>, vector<8x12xf32>, vector<8x12xf32> -> vector<64x12xf32>
    %101 = vector.extract_strided_slice %2 {offsets = [0, 6], sizes = [64, 1], strides = [1, 1]} : vector<64x12xf32> to vector<64x1xf32>
    %102 = vector.extract_strided_slice %100 {offsets = [0, 0], sizes = [64, 10], strides = [1, 1]} : vector<64x12xf32> to vector<64x10xf32>
    %103 = vector.broadcast %101 : vector<64x1xf32> to vector<64x10xf32>
    %104 = arith.mulf %103, %102 : vector<64x10xf32>
    %105 = arith.addf %98, %104 : vector<64x10xf32>
    %106 = vector.extract_strided_slice %2 {offsets = [0, 7], sizes = [64, 1], strides = [1, 1]} : vector<64x12xf32> to vector<64x1xf32>
    %107 = vector.extract_strided_slice %100 {offsets = [0, 1], sizes = [64, 10], strides = [1, 1]} : vector<64x12xf32> to vector<64x10xf32>
    %108 = vector.broadcast %106 : vector<64x1xf32> to vector<64x10xf32>
    %109 = arith.mulf %108, %107 : vector<64x10xf32>
    %110 = arith.addf %105, %109 : vector<64x10xf32>
    %111 = vector.extract_strided_slice %2 {offsets = [0, 8], sizes = [64, 1], strides = [1, 1]} : vector<64x12xf32> to vector<64x1xf32>
    %112 = vector.extract_strided_slice %100 {offsets = [0, 2], sizes = [64, 10], strides = [1, 1]} : vector<64x12xf32> to vector<64x10xf32>
    %113 = vector.broadcast %111 : vector<64x1xf32> to vector<64x10xf32>
    %114 = arith.mulf %113, %112 : vector<64x10xf32>
    %115 = arith.addf %110, %114 : vector<64x10xf32>
    %116 = vector.extract_strided_slice %63 {offsets = [24, 0], sizes = [8, 12], strides = [1, 1]} : vector<32x12xf32> to vector<8x12xf32>
    %117 = tpu.concatenate %116, %116, %116, %116, %116, %116, %116, %116 in 0 : vector<8x12xf32>, vector<8x12xf32>, vector<8x12xf32>, vector<8x12xf32>, vector<8x12xf32>, vector<8x12xf32>, vector<8x12xf32>, vector<8x12xf32> -> vector<64x12xf32>
    %118 = vector.extract_strided_slice %2 {offsets = [0, 9], sizes = [64, 1], strides = [1, 1]} : vector<64x12xf32> to vector<64x1xf32>
    %119 = vector.extract_strided_slice %117 {offsets = [0, 0], sizes = [64, 10], strides = [1, 1]} : vector<64x12xf32> to vector<64x10xf32>
    %120 = vector.broadcast %118 : vector<64x1xf32> to vector<64x10xf32>
    %121 = arith.mulf %120, %119 : vector<64x10xf32>
    %122 = arith.addf %115, %121 : vector<64x10xf32>
    %123 = vector.extract_strided_slice %2 {offsets = [0, 10], sizes = [64, 1], strides = [1, 1]} : vector<64x12xf32> to vector<64x1xf32>
    %124 = vector.extract_strided_slice %117 {offsets = [0, 1], sizes = [64, 10], strides = [1, 1]} : vector<64x12xf32> to vector<64x10xf32>
    %125 = vector.broadcast %123 : vector<64x1xf32> to vector<64x10xf32>
    %126 = arith.mulf %125, %124 : vector<64x10xf32>
    %127 = arith.addf %122, %126 : vector<64x10xf32>
    %128 = vector.extract_strided_slice %2 {offsets = [0, 11], sizes = [64, 1], strides = [1, 1]} : vector<64x12xf32> to vector<64x1xf32>
    %129 = vector.extract_strided_slice %117 {offsets = [0, 2], sizes = [64, 10], strides = [1, 1]} : vector<64x12xf32> to vector<64x10xf32>
    %130 = vector.broadcast %128 : vector<64x1xf32> to vector<64x10xf32>
    %131 = arith.mulf %130, %129 : vector<64x10xf32>
    %132 = arith.addf %127, %131 : vector<64x10xf32>
    %c0_15 = arith.constant 0 : index
    %c0_16 = arith.constant 0 : index
    %133 = vector.load %arg6[%c0_15, %c0_16] : memref<64x1xf32, #tpu.memory_space<vmem>>, vector<64x1xf32>
    %134 = vector.broadcast %133 : vector<64x1xf32> to vector<64x10xf32>
    %135 = arith.mulf %132, %134 : vector<64x10xf32>
    %c0_17 = arith.constant 0 : index
    %c0_18 = arith.constant 0 : index
    %136 = vector.load %arg7[%c0_17, %c0_18] : memref<64x1xf32, #tpu.memory_space<vmem>>, vector<64x1xf32>
    %137 = vector.broadcast %136 : vector<64x1xf32> to vector<64x10xf32>
    %138 = arith.addf %135, %137 : vector<64x10xf32>
    %cst_19 = arith.constant 0.000000e+00 : f32
    %139 = vector.broadcast %cst_19 : f32 to vector<64x10xf32>
    %140 = arith.maximumf %138, %139 : vector<64x10xf32>
    %cst_20 = arith.constant 0.000000e+00 : f32
    %141 = vector.broadcast %cst_20 : f32 to vector<64x4xf32>
    %142 = tpu.concatenate %140, %141 in 1 : vector<64x10xf32>, vector<64x4xf32> -> vector<64x14xf32>
    %143 = vector.extract_strided_slice %142 {offsets = [0, 0], sizes = [64, 10], strides = [1, 1]} : vector<64x14xf32> to vector<64x10xf32>
    %144 = vector.extract_strided_slice %142 {offsets = [0, 1], sizes = [64, 10], strides = [1, 1]} : vector<64x14xf32> to vector<64x10xf32>
    %145 = arith.maximumf %143, %144 : vector<64x10xf32>
    %146 = vector.extract_strided_slice %142 {offsets = [0, 2], sizes = [64, 10], strides = [1, 1]} : vector<64x14xf32> to vector<64x10xf32>
    %147 = arith.maximumf %145, %146 : vector<64x10xf32>
    %148 = vector.extract_strided_slice %142 {offsets = [0, 3], sizes = [64, 10], strides = [1, 1]} : vector<64x14xf32> to vector<64x10xf32>
    %149 = arith.maximumf %147, %148 : vector<64x10xf32>
    %150 = vector.extract_strided_slice %142 {offsets = [0, 4], sizes = [64, 10], strides = [1, 1]} : vector<64x14xf32> to vector<64x10xf32>
    %151 = arith.maximumf %149, %150 : vector<64x10xf32>
    %152 = tpu.iota {dimensions = array<i32: 0>} : vector<10x2xi32>
    %153 = tpu.iota {dimensions = array<i32: 1>} : vector<10x2xi32>
    %c5_i32_21 = arith.constant 5 : i32
    %154 = vector.broadcast %c5_i32_21 : i32 to vector<10x2xi32>
    %155 = arith.muli %154, %153 : vector<10x2xi32>
    %156 = arith.cmpi eq, %152, %155 : vector<10x2xi32>
    %157 = arith.extui %156 : vector<10x2xi1> to vector<10x2xi32>
    %158 = arith.sitofp %157 : vector<10x2xi32> to vector<10x2xf32>
    %159 = arith.truncf %151 : vector<64x10xf32> to vector<64x10xbf16>
    %160 = arith.extf %159 : vector<64x10xbf16> to vector<64x10xf32>
    %161 = arith.subf %151, %160 : vector<64x10xf32>
    %cst_22 = arith.constant dense<0.000000e+00> : vector<64x2xf32>
    %162 = tpu.matmul %160, %158, %cst_22 {dimension_numbers = #tpu.dot_dimension_numbers<[1], [0], [0], [1], [0, 0, 1, 1], [], []>} : vector<64x10xf32>, vector<10x2xf32>, vector<64x2xf32> -> vector<64x2xf32>
    %cst_23 = arith.constant dense<0.000000e+00> : vector<64x2xf32>
    %163 = tpu.matmul %161, %158, %cst_23 {dimension_numbers = #tpu.dot_dimension_numbers<[1], [0], [0], [1], [0, 0, 1, 1], [], []>} : vector<64x10xf32>, vector<10x2xf32>, vector<64x2xf32> -> vector<64x2xf32>
    %164 = arith.addf %162, %163 : vector<64x2xf32>
    %165 = vector.extract_strided_slice %164 {offsets = [0, 0], sizes = [8, 2], strides = [1, 1]} : vector<64x2xf32> to vector<8x2xf32>
    %166 = vector.extract_strided_slice %164 {offsets = [8, 0], sizes = [8, 2], strides = [1, 1]} : vector<64x2xf32> to vector<8x2xf32>
    %167 = vector.extract_strided_slice %164 {offsets = [16, 0], sizes = [8, 2], strides = [1, 1]} : vector<64x2xf32> to vector<8x2xf32>
    %168 = vector.extract_strided_slice %164 {offsets = [24, 0], sizes = [8, 2], strides = [1, 1]} : vector<64x2xf32> to vector<8x2xf32>
    %169 = vector.extract_strided_slice %164 {offsets = [32, 0], sizes = [8, 2], strides = [1, 1]} : vector<64x2xf32> to vector<8x2xf32>
    %170 = vector.extract_strided_slice %164 {offsets = [40, 0], sizes = [8, 2], strides = [1, 1]} : vector<64x2xf32> to vector<8x2xf32>
    %171 = vector.extract_strided_slice %164 {offsets = [48, 0], sizes = [8, 2], strides = [1, 1]} : vector<64x2xf32> to vector<8x2xf32>
    %172 = vector.extract_strided_slice %164 {offsets = [56, 0], sizes = [8, 2], strides = [1, 1]} : vector<64x2xf32> to vector<8x2xf32>
    %173 = tpu.concatenate %165, %166, %167, %168, %169, %170, %171, %172 in 1 : vector<8x2xf32>, vector<8x2xf32>, vector<8x2xf32>, vector<8x2xf32>, vector<8x2xf32>, vector<8x2xf32>, vector<8x2xf32>, vector<8x2xf32> -> vector<8x16xf32>
    %c0_24 = arith.constant 0 : index
    %c0_25 = arith.constant 0 : index
    %174 = vector.load %arg8[%c0_24, %c0_25] : memref<16x384xf32, #tpu.memory_space<vmem>>, vector<16x384xf32>
    %cst_26 = arith.constant dense<0.000000e+00> : vector<8x384xf32>
    %175 = tpu.matmul %173, %174, %cst_26 {dimension_numbers = #tpu.dot_dimension_numbers<[1], [0], [0], [1], [0, 0, 1, 1], [], []>} : vector<8x16xf32>, vector<16x384xf32>, vector<8x384xf32> -> vector<8x384xf32>
    %c0_27 = arith.constant 0 : index
    %c0_28 = arith.constant 0 : index
    %176 = vector.load %arg9[%c0_27, %c0_28] : memref<1x384xf32, #tpu.memory_space<vmem>>, vector<1x384xf32>
    %177 = vector.broadcast %176 : vector<1x384xf32> to vector<8x384xf32>
    %178 = arith.addf %175, %177 : vector<8x384xf32>
    %cst_29 = arith.constant 0.000000e+00 : f32
    %179 = vector.broadcast %cst_29 : f32 to vector<8x384xf32>
    %180 = arith.maximumf %178, %179 : vector<8x384xf32>
    %c0_30 = arith.constant 0 : index
    %c0_31 = arith.constant 0 : index
    %181 = vector.load %arg10[%c0_30, %c0_31] : memref<384x128xf32, #tpu.memory_space<vmem>>, vector<384x128xf32>
    %cst_32 = arith.constant dense<0.000000e+00> : vector<8x128xf32>
    %182 = tpu.matmul %180, %181, %cst_32 {dimension_numbers = #tpu.dot_dimension_numbers<[1], [0], [0], [1], [0, 0, 1, 1], [], []>} : vector<8x384xf32>, vector<384x128xf32>, vector<8x128xf32> -> vector<8x128xf32>
    %c0_33 = arith.constant 0 : index
    %c0_34 = arith.constant 0 : index
    %183 = vector.load %arg11[%c0_33, %c0_34] : memref<1x128xf32, #tpu.memory_space<vmem>>, vector<1x128xf32>
    %184 = vector.broadcast %183 : vector<1x128xf32> to vector<8x128xf32>
    %185 = arith.addf %182, %184 : vector<8x128xf32>
    %c0_35 = arith.constant 0 : index
    %c0_36 = arith.constant 0 : index
    %186 = vector.load %arg12[%c0_35, %c0_36] : memref<8x128xf32, #tpu.memory_space<vmem>>, vector<8x128xf32>
    tpu.vector_store %arg12[%c0_35, %c0_36], %185 {strides = array<i32>} : memref<8x128xf32, #tpu.memory_space<vmem>>, vector<8x128xf32>,
    return
  }
  func.func @transform_0(%arg0: i32) -> (i32, i32) {
    %c0_i32 = arith.constant 0 : i32
    %c0_i32_0 = arith.constant 0 : i32
    return %arg0, %c0_i32 : i32, i32
  }
  func.func @transform_1(%arg0: i32) -> (i32, i32) {
    %c0_i32 = arith.constant 0 : i32
    %c0_i32_0 = arith.constant 0 : i32
    %c0_i32_1 = arith.constant 0 : i32
    return %c0_i32, %c0_i32_0 : i32, i32
  }
  func.func @transform_2(%arg0: i32) -> (i32, i32) {
    %c0_i32 = arith.constant 0 : i32
    %c0_i32_0 = arith.constant 0 : i32
    %c0_i32_1 = arith.constant 0 : i32
    return %c0_i32, %c0_i32_0 : i32, i32
  }
  func.func @transform_3(%arg0: i32) -> (i32, i32) {
    %c0_i32 = arith.constant 0 : i32
    %c0_i32_0 = arith.constant 0 : i32
    %c0_i32_1 = arith.constant 0 : i32
    return %c0_i32, %c0_i32_0 : i32, i32
  }
  func.func @transform_4(%arg0: i32) -> (i32, i32) {
    %c0_i32 = arith.constant 0 : i32
    %c0_i32_0 = arith.constant 0 : i32
    %c0_i32_1 = arith.constant 0 : i32
    return %c0_i32, %c0_i32_0 : i32, i32
  }
  func.func @transform_5(%arg0: i32) -> (i32, i32) {
    %c0_i32 = arith.constant 0 : i32
    %c0_i32_0 = arith.constant 0 : i32
    %c0_i32_1 = arith.constant 0 : i32
    return %c0_i32, %c0_i32_0 : i32, i32
  }
  func.func @transform_6(%arg0: i32) -> (i32, i32) {
    %c0_i32 = arith.constant 0 : i32
    %c0_i32_0 = arith.constant 0 : i32
    %c0_i32_1 = arith.constant 0 : i32
    return %c0_i32, %c0_i32_0 : i32, i32
  }
  func.func @transform_7(%arg0: i32) -> (i32, i32) {
    %c0_i32 = arith.constant 0 : i32
    %c0_i32_0 = arith.constant 0 : i32
    %c0_i32_1 = arith.constant 0 : i32
    return %c0_i32, %c0_i32_0 : i32, i32
  }
  func.func @transform_8(%arg0: i32) -> (i32, i32) {
    %c0_i32 = arith.constant 0 : i32
    %c0_i32_0 = arith.constant 0 : i32
    %c0_i32_1 = arith.constant 0 : i32
    return %c0_i32, %c0_i32_0 : i32, i32
  }
  func.func @transform_9(%arg0: i32) -> (i32, i32) {
    %c0_i32 = arith.constant 0 : i32
    %c0_i32_0 = arith.constant 0 : i32
    %c0_i32_1 = arith.constant 0 : i32
    return %c0_i32, %c0_i32_0 : i32, i32
  }
  func.func @transform_10(%arg0: i32) -> (i32, i32) {
    %c0_i32 = arith.constant 0 : i32
    %c0_i32_0 = arith.constant 0 : i32
    %c0_i32_1 = arith.constant 0 : i32
    return %c0_i32, %c0_i32_0 : i32, i32
  }
  func.func @transform_11(%arg0: i32) -> (i32, i32) {
    %c0_i32 = arith.constant 0 : i32
    %c0_i32_0 = arith.constant 0 : i32
    return %arg0, %c0_i32 : i32, i32
  }
}

</mosaic_0001>

<bundles_post_ra>
// kernel: kbs3_forward.1
= control target key start
LH: loop header
LB: loop body
LE: loop exit
PB: predicated region body
PF: predicated region fallthrough
CT: control target
= control target key end

     0   :  { %v2801_v0 = vmov 2   ;;  %v2802_v1 = vmov 1   ;;  %v2803_v4 = vmov 3   ;;  %v2804_v5 = vmov 4   ;;  %s2806_s23 = smov 127   ;;  %s2819_s16 = smov 1   ;;  %s4297_s1 = inlined_call_operand.vmem [shape: f32[32,5], index: 1, kind: input, shape index: {}]   ;;  %s4298_s2 = inlined_call_operand.vmem [shape: f32[32,1], index: 2, kind: input, shape index: {}]   ;;  %s4299_s3 = inlined_call_operand.vmem [shape: f32[32,1], index: 3, kind: input, shape index: {}]   ;;  %s4300_s0 = inlined_call_operand.vmem [shape: f32[8,54], index: 0, kind: input, shape index: {}]   ;;  %s4301_s4 = inlined_call_operand.vmem [shape: f32[64,12], index: 4, kind: input, shape index: {}]   ;;  %s4302_s6 = inlined_call_operand.vmem [shape: f32[64,1], index: 6, kind: input, shape index: {}]   ;;  %s4303_s5 = inlined_call_operand.vmem [shape: f32[64,1], index: 5, kind: input, shape index: {}]   ;;  %s4304_s7 = inlined_call_operand.vmem [shape: f32[16,384], index: 7, kind: input, shape index: {}]   ;;  %s4305_s9 = inlined_call_operand.vmem [shape: f32[384,128], index: 9, kind: input, shape index: {}]   ;;  %s4306_s8 = inlined_call_operand.vmem [shape: f32[1,384], index: 8, kind: input, shape index: {}]   ;;  %s4307_s10 = inlined_call_operand.vmem [shape: f32[1,128], index: 10, kind: input, shape index: {}]   ;;  %s4308_s11 = inlined_call_operand.vmem [shape: f32[8,128], index: 11, kind: output, shape index: {}]  }
   0x1   :  { %2727 = vset.pattern.permute.xlu1 %v2801_v0  ;;  %2726 = vset.pattern.permute.xlu0 %v2802_v1  ;;  %v39_v2 = vld [vmem:[%s4297_s1] sm:$0xff]  ;;  %v40_v3 = vld [vmem:[%s4297_s1 + $0x8] sm:$0xff]  ;;  %v41_v6 = vld [vmem:[%s4297_s1 + $0x10] sm:$0xff]  ;;  %v4316_v8 = vmov 0   ;;  %vm426_vm1 = vcmask 1041408   ;;  %vm299_vm2 = vcmask 408576  }
   0x2   :  { %120 = vperm.xlu1 %2727, %v39_v2   ;;  %80 = vperm.xlu0 %2726, %v39_v2   ;;  %v42_v7 = vld [vmem:[%s4297_s1 + $0x18] sm:$0xff]  ;;  %v240_v9 = vld [vmem:[%s4298_s2 + $0x8] sm:$0xff]  ;;  %v239_v13 = vld [vmem:[%s4298_s2] sm:$0xff]  ;;  %vm628_vm9 = vcmask 7168   ;;  %vm633_vm10 = vcmask 89088   ;;  %vm1598_vm11 = vcmask 80896  }
   0x3   :  { %v268_v10 = vld [vmem:[%s4299_s3 + $0x8] sm:$0xff]  ;;  %v242_v11 = vld [vmem:[%s4298_s2 + $0x18] sm:$0xff]  ;;  %v267_v14 = vld [vmem:[%s4299_s3] sm:$0xff]  ;;  %s2821_s12 = smov 6   ;;  %s2822_s13 = smov 4   ;;  %vm2823_vm12 = vmmov 0  }
   0x4   :  { %v270_v12 = vld [vmem:[%s4299_s3 + $0x18] sm:$0xff]  ;;  %v241_v15 = vld [vmem:[%s4298_s2 + $0x10] sm:$0xff]  ;;  %v2943_v17 = vld [vmem:[%s4300_s0] sm:$0xff]  ;;  %s2807_s2 = smov 126   ;;  %s2808_s0 = smov 125   ;;  %vm2052_vm13 = vcmask 15360  }
   0x5   :  { %v269_v16 = vld [vmem:[%s4299_s3 + $0x10] sm:$0xff]  ;;  %s2809_s3 = smov 124   ;;  %s2824_s21 = smov 10   ;;  %vm2054_vm14 = vcmask 31744   ;;  %vm2056_vm15 = vcmask 48128  }
   0x6   :  { %124 = vperm.xlu1 %2727, %v40_v3   ;;  %84 = vperm.xlu0 %2726, %v40_v3   ;;  %s2825_s25 = smov 8   ;;  %s2827_s26 = smov 12  }
   0xa   :  { %2729 = vset.pattern.permute.xlu1 %v2803_v4  ;;  %2728 = vset.pattern.permute.xlu0 %v2803_v4 }
   0xb   :  { %164 = vperm.xlu1 %2729, %v40_v3   ;;  %160 = vperm.xlu0 %2728, %v39_v2  }
   0xf   :  { %2730 = vset.pattern.permute.xlu1 %v2804_v5  ;;  %2731 = vset.pattern.permute.xlu0 %v2804_v5 }
  0x10   :  { %200 = vperm.xlu1 %2730, %v39_v2   ;;  %204 = vperm.xlu0 %2731, %v40_v3  }
  0x14   :  { %2732 = vset.pattern.permute.xlu1 %v2802_v1  ;;  %2733 = vset.pattern.permute.xlu0 %v2801_v0 }
  0x15   :  { %88 = vperm.xlu1 %2732, %v41_v6   ;;  %128 = vperm.xlu0 %2733, %v41_v6  }
  0x19   :  { %92 = vperm.xlu1 %2732, %v42_v7   ;;  %2736 = vset.pattern.permute.xlu0 %v2803_v4 }
  0x1a   :  { %172 = vperm.xlu0 %2736, %v42_v7  }
  0x1d   :  { %2734 = vset.pattern.permute.xlu1 %v2801_v0 }
  0x1e   :  { %132 = vperm.xlu1 %2734, %v42_v7   ;;  %2738 = vset.pattern.permute.xlu0 %v4316_v8 }
  0x1f   :  { %53 = vperm.xlu0 %2738, %v39_v2  }
  0x22   :  { %2735 = vset.pattern.permute.xlu1 %v2803_v4 }
  0x23   :  { %168 = vperm.xlu1 %2735, %v41_v6   ;;  %250 = vperm.xlu0 %2738, %v240_v9  }
  0x27   :  { %2737 = vset.pattern.permute.xlu1 %v2804_v5  ;;  %68 = vperm.xlu0 %2738, %v42_v7  }
  0x28   :  { %208 = vperm.xlu1 %2737, %v41_v6  }
  0x2b   :  { %278 = vperm.xlu0 %2738, %v268_v10  }
  0x2c   :  { %212 = vperm.xlu1 %2737, %v42_v7  }
  0x2f   :  { %260 = vperm.xlu0 %2738, %v242_v11   ;;  %v372_v11 = vlaneseq }
  0x30   :  { %2739 = vset.pattern.permute.xlu1 %v4316_v8 }
  0x31   :  { %58 = vperm.xlu1 %2739, %v40_v3  }
  0x33   :  { %288 = vperm.xlu0 %2738, %v270_v12  }
  0x35   :  { %245 = vperm.xlu1 %2739, %v239_v13  }
  0x37   :  { %2741 = vset.pattern.permute.xlu0 %v2802_v1 }
  0x39   :  { %63 = vperm.xlu1 %2739, %v41_v6  }
  0x3d   :  { %273 = vperm.xlu1 %2739, %v267_v14  }
  0x41   :  { %255 = vperm.xlu1 %2739, %v241_v15   ;;  %v2991_v15 = vshrl.u32 %v372_v11, 7 }
  0x43   :  { %4320 = vst [vmem:[#allocation2_spill] sm:$0xff] %v2991_v15 }
  0x45   :  { %283 = vperm.xlu1 %2739, %v269_v16   ;;  %v381_v16 = vand.u32 127, %v372_v11 }
  0x49   :  { %2740 = vset.pattern.permute.xlu1 %v2802_v1 }
  0x7d   :  { %v121_v18 = vpop.permute.xlu1 %120  ;;  %v81_v19 = vpop.permute.xlu0 %80 }
  0x7e   :  { %v95_v20 = vmul.f32 %v81_v19, %v2943_v17  ;;  %v135_v23 = vmul.f32 %v121_v18, %v2943_v17 }
  0x80   :  { %103 = vrot.lane.b32.xlu1 %v95_v20, %s2806_s23 }
  0x81   :  { %v125_v21 = vpop.permute.xlu1 %124  ;;  %v85_v22 = vpop.permute.xlu0 %84 }
  0x82   :  { %v96_v24 = vmul.f32 %v85_v22, %v2943_v17  ;;  %v136_v25 = vmul.f32 %v125_v21, %v2943_v17  ;;  %v379_v21 = vadd.s32 48, %v2991_v15  ;;  %v382_v22 = vmul.u32 5, %v381_v16  ;;  %v3142_v16 = vld [vmem:[%s4301_s4 + $0x20] sm:$0xff] }
  0x84   :  { %105 = vrot.lane.b32.xlu0 %v96_v24, %s2806_s23  ;;  %143 = vrot.lane.b32.xlu1 %v135_v23, %s2807_s2  ;;  %vm389_vm0 = vcmp.eq.s32.totalorder %v379_v21, %v382_v22  ;;  %vm3048_vm8 = vcmp.eq.s32.totalorder %v2991_v15, %v382_v22  ;;  %v3186_v21 = vld [vmem:[%s4301_s4 + $0x38] sm:$0xff] }
  0x86   :  { %v165_v26 = vpop.permute.xlu1 %164  ;;  %v161_v27 = vpop.permute.xlu0 %160 }
  0x87   :  { %v175_v28 = vmul.f32 %v161_v27, %v2943_v17  ;;  %v176_v29 = vmul.f32 %v165_v26, %v2943_v17 }
  0x88   :  { %145 = vrot.lane.b32.xlu0 %v136_v25, %s2807_s2 }
  0x89   :  { %183 = vrot.lane.b32.xlu1 %v175_v28, %s2808_s0  ;;  %v4311_v28 = vmov 0.0  }
  0x8b   :  { %v201_v30 = vpop.permute.xlu1 %200  ;;  %v205_v31 = vpop.permute.xlu0 %204 }
  0x8c   :  { %v215_v32 = vmul.f32 %v201_v30, %v2943_v17  ;;  %185 = vrot.lane.b32.xlu0 %v176_v29, %s2808_s0  ;;  %v216_v33 = vmul.f32 %v205_v31, %v2943_v17  ;;  %v2442_v29 = vsel %vm389_vm0, 1.0, %v4311_v28  ;;  %v378_v30 = vadd.s32 40, %v2991_v15 }
  0x8d   :  { %2605 = vmatprep.subr.msk.mxu1 %vm426_vm1, %v2442_v29  ;;  %2585 = vmatprep.subr.msk.mxu0 %vm426_vm1, %v2442_v29  ;;  %vm2058_vm0 = vcmask 64512  }
  0x8e   :  { %223 = vrot.lane.b32.xlu1 %v215_v32, %s2809_s3  ;;  %2606 = vmatpush3.msk.msra.mxu1 %vm426_vm1, %v2442_v29  ;;  %vm388_vm3 = vcmp.eq.s32.totalorder %v378_v30, %v382_v22  ;;  %v2816_v30 = vmov 11  }
  0x8f   :  { %2586 = vmatpush3.msk.msra.mxu0 %vm426_vm1, %v2442_v29 }
  0x90   :  { %v89_v34 = vpop.permute.xlu1 %88  ;;  %225 = vrot.lane.b32.xlu0 %v216_v33, %s2809_s3  ;;  %v129_v35 = vpop.permute.xlu0 %128  ;;  %v377_v33 = vadd.s32 32, %v2991_v15 }
  0x91   :  { %v97_v36 = vmul.f32 %v89_v34, %v2943_v17  ;;  %v137_v37 = vmul.f32 %v129_v35, %v2943_v17 }
  0x92   :  { %vm387_vm4 = vcmp.eq.s32.totalorder %v377_v33, %v382_v22 }
  0x93   :  { %107 = vrot.lane.b32.xlu1 %v97_v36, %s2806_s23  ;;  %v4309_v36 = vmov 1.0  }
  0x94   :  { %v93_v38 = vpop.permute.xlu1 %92  ;;  %2607 = vmatprep.subr.msk.mxu1 %vm388_vm3, %v4309_v36  ;;  %2587 = vmatprep.subr.msk.mxu0 %vm388_vm3, %v4309_v36 }
  0x95   :  { %v98_v39 = vmul.f32 %v93_v38, %v2943_v17  ;;  %v173_v41 = vpop.permute.xlu0 %172  ;;  %2608 = vmatpush3.msk.msra.mxu1 %vm388_vm3, %v4309_v36  ;;  %2588 = vmatpush3.msk.msra.mxu0 %vm388_vm3, %v4309_v36  ;;  %vm2088_vm3 = vcmask 130048  }
  0x96   :  { %v178_v43 = vmul.f32 %v173_v41, %v2943_v17  ;;  %2609 = vmatprep.subr.msk.mxu1 %vm387_vm4, %v4309_v36  ;;  %2589 = vmatprep.subr.msk.mxu0 %vm387_vm4, %v4309_v36  ;;  %v375_v41 = vadd.s32 16, %v2991_v15 }
  0x97   :  { %109 = vrot.lane.b32.xlu0 %v98_v39, %s2806_s23  ;;  %147 = vrot.lane.b32.xlu1 %v137_v37, %s2807_s2  ;;  %v376_v37 = vadd.s32 24, %v2991_v15 }
  0x98   :  { %2610 = vmatpush3.msk.msra.mxu1 %vm387_vm4, %v4309_v36  ;;  %2590 = vmatpush3.msk.msra.mxu0 %vm387_vm4, %v4309_v36  ;;  %vm385_vm6 = vcmp.eq.s32.totalorder %v375_v41, %v382_v22 }
  0x99   :  { %v133_v40 = vpop.permute.xlu1 %132  ;;  %vm386_vm5 = vcmp.eq.s32.totalorder %v376_v37, %v382_v22 }
  0x9a   :  { %v138_v42 = vmul.f32 %v133_v40, %v2943_v17  ;;  %v54_v51 = vpop.permute.xlu0 %53  ;;  %2611 = vmatprep.subr.msk.mxu1 %vm386_vm5, %v4309_v36  ;;  %2591 = vmatprep.subr.msk.mxu0 %vm386_vm5, %v4309_v36 }
  0x9b   :  { %v71_v63 = vmul.f32 %v54_v51, %v2943_v17  ;;  %2612 = vmatpush3.msk.msra.mxu1 %vm386_vm5, %v4309_v36  ;;  %2592 = vmatpush3.msk.msra.mxu0 %vm386_vm5, %v4309_v36 }
  0x9c   :  { %149 = vrot.lane.b32.xlu0 %v138_v42, %s2807_s2  ;;  %2613 = vmatprep.subr.msk.mxu1 %vm385_vm6, %v4309_v36 }
  0x9d   :  { %2614 = vmatpush3.msk.msra.mxu1 %vm385_vm6, %v4309_v36  ;;  %2593 = vmatprep.subr.msk.mxu0 %vm385_vm6, %v4309_v36 }
  0x9e   :  { %v169_v44 = vpop.permute.xlu1 %168  ;;  %v251_v53 = vpop.permute.xlu0 %250  ;;  %2594 = vmatpush3.msk.msra.mxu0 %vm385_vm6, %v4309_v36 }
  0x9f   :  { %v177_v45 = vmul.f32 %v169_v44, %v2943_v17 }
  0xa0   :  { %189 = vrot.lane.b32.xlu0 %v178_v43, %s2808_s0  ;;  %v374_v43 = vadd.s32 8, %v2991_v15 }
  0xa1   :  { %187 = vrot.lane.b32.xlu1 %v177_v45, %s2808_s0  ;;  %v4321_v45 = vmov 0 }
  0xa2   :  { %v2979_v55 = vpop.permute.xlu0 %68  ;;  %vm3030_vm7 = vcmp.eq.s32.totalorder %v374_v43, %v382_v22  ;;  %v2813_v22 = vmov 8  }
  0xa3   :  { %v209_v46 = vpop.permute.xlu1 %208  ;;  %v4322_v45 = vsel %vm3030_vm7, 4294967295, %v4321_v45  ;;  %2615 = vmatprep.subr.msk.mxu1 %vm3030_vm7, %v4309_v36  ;;  %2595 = vmatprep.subr.msk.mxu0 %vm3030_vm7, %v4309_v36 }
  0xa4   :  { %v217_v47 = vmul.f32 %v209_v46, %v2943_v17  ;;  %4323 = vst [vmem:[#allocation3_spill] sm:$0xff] %v4322_v45  ;;  %2616 = vmatpush3.msk.msra.mxu1 %vm3030_vm7, %v4309_v36  ;;  %2596 = vmatpush3.msk.msra.mxu0 %vm3030_vm7, %v4309_v36 }
  0xa5   :  { %2617 = vmatprep.subr.msk.mxu1 %vm3048_vm8, %v4309_v36  ;;  %2597 = vmatprep.subr.msk.mxu0 %vm3048_vm8, %v4309_v36 }
  0xa6   :  { %227 = vrot.lane.b32.xlu1 %v217_v47, %s2809_s3  ;;  %v279_v57 = vpop.permute.xlu0 %278  ;;  %v4324_v47 = vmov 0  ;;  %2618 = vmatpush3.msk.msra.mxu1 %vm3048_vm8, %v4309_v36 }
  0xa7   :  { %v213_v48 = vpop.permute.xlu1 %212  ;;  %v4325_v47 = vsel %vm3048_vm8, 4294967295, %v4324_v47  ;;  %2598 = vmatpush3.msk.msra.mxu0 %vm3048_vm8, %v4309_v36 }
  0xa8   :  { %v218_v49 = vmul.f32 %v213_v48, %v2943_v17  ;;  %4326 = vst [vmem:[#allocation4_spill] sm:$0xff] %v4325_v47 }
  0xaa   :  { %229 = vrot.lane.b32.xlu0 %v218_v49, %s2809_s3  ;;  %v2983_v59 = vpop.permute.xlu0 %260 }
  0xac   :  { %v59_v50 = vpop.permute.xlu1 %58 }
  0xad   :  { %v72_v9 = vmul.f32 %v59_v50, %v2943_v17 }
  0xae   :  { %v2987_v61 = vpop.permute.xlu0 %288 }
  0xb0   :  { %v246_v52 = vpop.permute.xlu1 %245 }
  0xb4   :  { %v2977_v54 = vpop.permute.xlu1 %63 }
  0xb5   :  { %v73_v48 = vmul.f32 %v2977_v54, %v2943_v17 }
  0xb8   :  { %v274_v56 = vpop.permute.xlu1 %273 }
  0xbc   :  { %v2981_v58 = vpop.permute.xlu1 %255 }
  0xc0   :  { %v2985_v60 = vpop.permute.xlu1 %283 }
  0xf2   :  { %v104_v62 = vpop.permute.xlu1 %103 }
  0xf3   :  { %v115_v6 = vadd.f32 %v104_v62, %v71_v63 }
  0xf6   :  { %v106_v2 = vpop.permute.xlu0 %105  ;;  %v144_v3 = vpop.permute.xlu1 %143 }
  0xf7   :  { %v116_v12 = vadd.f32 %v106_v2, %v72_v9  ;;  %v155_v13 = vadd.f32 %v144_v3, %v115_v6 }
  0xfa   :  { %v146_v7 = vpop.permute.xlu0 %145 }
  0xfb   :  { %v184_v10 = vpop.permute.xlu1 %183  ;;  %v156_v18 = vadd.f32 %v146_v7, %v116_v12 }
  0xfc   :  { %v195_v19 = vadd.f32 %v184_v10, %v155_v13 }
  0xfe   :  { %v186_v14 = vpop.permute.xlu0 %185 }
  0xff   :  { %v196_v23 = vadd.f32 %v186_v14, %v156_v18  ;;  %v3149_v18 = vld [vmem:[%s4301_s4 + $0x30] sm:$0xff] }
 0x100   :  { %v224_v20 = vpop.permute.xlu1 %223 }
 0x101   :  { %v235_v24 = vadd.f32 %v224_v20, %v195_v19  ;;  %v3162_v19 = vld [vmem:[%s4301_s4 + $0x28] sm:$0xff]  ;;  %v2812_v20 = vmov 5  }
 0x102   :  { %v226_v25 = vpop.permute.xlu0 %225 }
 0x103   :  { %v263_v26 = vmul.f32 %v246_v52, %v235_v24  ;;  %v236_v27 = vadd.f32 %v226_v25, %v196_v23  ;;  %v74_v52 = vmul.f32 %v2979_v55, %v2943_v17  ;;  %v2814_v23 = vmov 7  }
 0x104   :  { %v2815_v25 = vmov 10  }
 0x105   :  { %v291_v31 = vadd.f32 %v274_v56, %v263_v26  ;;  %v264_v32 = vmul.f32 %v251_v53, %v236_v27  ;;  %v108_v39 = vpop.permute.xlu1 %107 }
 0x106   :  { %v117_v50 = vadd.f32 %v108_v39, %v73_v48 }
 0x107   :  { %v295_v34 = vmax.f32 %v291_v31, 0.0  ;;  %v292_v35 = vadd.f32 %v279_v57, %v264_v32 }
 0x109   :  { %v296_v38 = vmax.f32 %v292_v35, 0.0  ;;  %v3007_v40 = vsel %vm299_vm2, %v295_v34, 0.0  ;;  %v110_v44 = vpop.permute.xlu0 %109  ;;  %v148_v46 = vpop.permute.xlu1 %147 }
 0x10a   :  { %308 = vrot.lane.b32.xlu1 %v3007_v40, %s2806_s23  ;;  %v157_v53 = vadd.f32 %v148_v46, %v117_v50  ;;  %v118_v54 = vadd.f32 %v110_v44, %v74_v52 }
 0x10b   :  { %v3016_v42 = vsel %vm299_vm2, %v296_v38, 0.0 }
 0x10c   :  { %310 = vrot.lane.b32.xlu0 %v3016_v42, %s2806_s23 }
 0x10e   :  { %324 = vrot.lane.b32.xlu1 %v3007_v40, %s2807_s2  ;;  %v150_v49 = vpop.permute.xlu0 %149 }
 0x10f   :  { %v158_v17 = vadd.f32 %v150_v49, %v118_v54 }
 0x110   :  { %326 = vrot.lane.b32.xlu0 %v3016_v42, %s2807_s2 }
 0x112   :  { %340 = vrot.lane.b32.xlu1 %v3007_v40, %s2808_s0  ;;  %v190_v57 = vpop.permute.xlu0 %189 }
 0x113   :  { %v188_v51 = vpop.permute.xlu1 %187  ;;  %v198_v63 = vadd.f32 %v190_v57, %v158_v17  ;;  %v2817_v57 = vmov 6  }
 0x114   :  { %342 = vrot.lane.b32.xlu0 %v3016_v42, %s2808_s0  ;;  %v197_v56 = vadd.f32 %v188_v51, %v157_v53 }
 0x116   :  { %356 = vrot.lane.b32.xlu1 %v3007_v40, %s2809_s3 }
 0x118   :  { %v228_v62 = vpop.permute.xlu1 %227  ;;  %358 = vrot.lane.b32.xlu0 %v3016_v42, %s2809_s3 }
 0x119   :  { %v237_v55 = vadd.f32 %v228_v62, %v197_v56 }
 0x11b   :  { %v265_v2 = vmul.f32 %v2981_v58, %v237_v55  ;;  %v3114_v58 = vld [vmem:[%s4301_s4] sm:$0xff] }
 0x11c   :  { %v230_v3 = vpop.permute.xlu0 %229 }
 0x11d   :  { %v293_v6 = vadd.f32 %v2985_v60, %v265_v2  ;;  %v238_v7 = vadd.f32 %v230_v3, %v198_v63  ;;  %v3130_v60 = vld [vmem:[%s4301_s4 + $0x18] sm:$0xff] }
 0x11f   :  { %v297_v9 = vmax.f32 %v293_v6, 0.0  ;;  %v266_v10 = vmul.f32 %v2983_v59, %v238_v7  ;;  %v3122_v59 = vld [vmem:[%s4301_s4 + $0x8] sm:$0xff] }
 0x121   :  { %v294_v11 = vadd.f32 %v2987_v61, %v266_v10  ;;  %v3092_v12 = vsel %vm299_vm2, %v297_v9, 0.0  ;;  %v3137_v61 = vld [vmem:[%s4301_s4 + $0x10] sm:$0xff] }
 0x122   :  { %312 = vrot.lane.b32.xlu1 %v3092_v12, %s2806_s23 }
 0x123   :  { %v298_v13 = vmax.f32 %v294_v11, 0.0 }
 0x125   :  { %v3097_v14 = vsel %vm299_vm2, %v298_v13, 0.0 }
 0x126   :  { %314 = vrot.lane.b32.xlu0 %v3097_v14, %s2806_s23  ;;  %328 = vrot.lane.b32.xlu1 %v3092_v12, %s2807_s2 }
 0x12a   :  { %330 = vrot.lane.b32.xlu0 %v3097_v14, %s2807_s2  ;;  %344 = vrot.lane.b32.xlu1 %v3092_v12, %s2808_s0 }
 0x12e   :  { %346 = vrot.lane.b32.xlu0 %v3097_v14, %s2808_s0  ;;  %360 = vrot.lane.b32.xlu1 %v3092_v12, %s2809_s3 }
 0x132   :  { %362 = vrot.lane.b32.xlu0 %v3097_v14, %s2809_s3  ;;  %695 = vperm.xlu1 %2740, %v3114_v58  }
 0x136   :  { %2742 = vset.pattern.permute.xlu1 %v2801_v0  ;;  %699 = vperm.xlu0 %2741, %v3122_v59  }
 0x137   :  { %775 = vperm.xlu1 %2742, %v3114_v58  }
 0x13a   :  { %707 = vperm.xlu0 %2741, %v3130_v60  }
 0x13b   :  { %779 = vperm.xlu1 %2742, %v3122_v59  }
 0x13e   :  { %711 = vperm.xlu0 %2741, %v3142_v16  }
 0x13f   :  { %2743 = vset.pattern.permute.xlu1 %v2802_v1 }
 0x140   :  { %703 = vperm.xlu1 %2743, %v3137_v61  }
 0x142   :  { %719 = vperm.xlu0 %2741, %v3149_v18  }
 0x144   :  { %2744 = vset.pattern.permute.xlu1 %v2801_v0 }
 0x145   :  { %783 = vperm.xlu1 %2744, %v3137_v61  }
 0x146   :  { %2750 = vset.pattern.permute.xlu0 %v2801_v0 }
 0x147   :  { %787 = vperm.xlu0 %2750, %v3130_v60  }
 0x149   :  { %2745 = vset.pattern.permute.xlu1 %v2804_v5 }
 0x14a   :  { %903 = vperm.xlu1 %2745, %v3114_v58  }
 0x14b   :  { %795 = vperm.xlu0 %2750, %v3162_v19  }
 0x14e   :  { %907 = vperm.xlu1 %2745, %v3122_v59  }
 0x14f   :  { %799 = vperm.xlu0 %2750, %v3149_v18  }
 0x152   :  { %2746 = vset.pattern.permute.xlu1 %v2802_v1 }
 0x153   :  { %715 = vperm.xlu1 %2746, %v3162_v19   ;;  %2756 = vset.pattern.permute.xlu0 %v2804_v5 }
 0x154   :  { %923 = vperm.xlu0 %2756, %v3162_v19  }
 0x157   :  { %2747 = vset.pattern.permute.xlu1 %v2812_v20 }
 0x158   :  { %983 = vperm.xlu1 %2747, %v3114_v58   ;;  %927 = vperm.xlu0 %2756, %v3149_v18  }
 0x15c   :  { %2748 = vset.pattern.permute.xlu1 %v2801_v0  ;;  %2760 = vset.pattern.permute.xlu0 %v2812_v20 }
 0x15d   :  { %791 = vperm.xlu1 %2748, %v3142_v16   ;;  %987 = vperm.xlu0 %2760, %v3122_v59  }
 0x161   :  { %2749 = vset.pattern.permute.xlu1 %v2804_v5  ;;  %995 = vperm.xlu0 %2760, %v3130_v60  }
 0x162   :  { %911 = vperm.xlu1 %2749, %v3137_v61  }
 0x165   :  { %1003 = vperm.xlu0 %2760, %v3162_v19  }
 0x166   :  { %915 = vperm.xlu1 %2749, %v3130_v60  }
 0x169   :  { %1007 = vperm.xlu0 %2760, %v3149_v18  }
 0x16a   :  { %2751 = vset.pattern.permute.xlu1 %v2802_v1 }
 0x16b   :  { %723 = vperm.xlu1 %2751, %v3186_v21  }
 0x16d   :  { %2764 = vset.pattern.permute.xlu0 %v2813_v22 }
 0x16e   :  { %1203 = vperm.xlu0 %2764, %v3130_v60  }
 0x16f   :  { %2752 = vset.pattern.permute.xlu1 %v2812_v20 }
 0x170   :  { %991 = vperm.xlu1 %2752, %v3137_v61  }
 0x172   :  { %1211 = vperm.xlu0 %2764, %v3162_v19  }
 0x174   :  { %2753 = vset.pattern.permute.xlu1 %v2814_v23 }
 0x175   :  { %1111 = vperm.xlu1 %2753, %v3114_v58  }
 0x176   :  { %2769 = vset.pattern.permute.xlu0 %v2814_v23 }
 0x177   :  { %1131 = vperm.xlu0 %2769, %v3162_v19  }
 0x179   :  { %1115 = vperm.xlu1 %2753, %v3122_v59  }
 0x17b   :  { %1135 = vperm.xlu0 %2769, %v3149_v18  }
 0x17c   :  { %v309_v1 = vpop.permute.xlu1 %308 }
 0x17d   :  { %2754 = vset.pattern.permute.xlu1 %v2801_v0  ;;  %v320_v0 = vmax.f32 %v3007_v40, %v309_v1  ;;  %v4313_v1 = vmov 9  }
 0x17e   :  { %v311_v24 = vpop.permute.xlu0 %310  ;;  %803 = vperm.xlu1 %2754, %v3186_v21  }
 0x17f   :  { %2774 = vset.pattern.permute.xlu0 %v2815_v25  ;;  %v321_v31 = vmax.f32 %v3016_v42, %v311_v24 }
 0x180   :  { %v325_v26 = vpop.permute.xlu1 %324  ;;  %1335 = vperm.xlu0 %2774, %v3142_v16  }
 0x181   :  { %v336_v33 = vmax.f32 %v320_v0, %v325_v26 }
 0x182   :  { %v327_v27 = vpop.permute.xlu0 %326  ;;  %2755 = vset.pattern.permute.xlu1 %v2804_v5 }
 0x183   :  { %919 = vperm.xlu1 %2755, %v3142_v16   ;;  %v337_v34 = vmax.f32 %v321_v31, %v327_v27  ;;  %v1534_v31 = vld [vmem:[%s4302_s6] sm:$0xff] }
 0x184   :  { %v341_v29 = vpop.permute.xlu1 %340  ;;  %2775 = vset.pattern.permute.xlu0 %v2816_v30 }
 0x185   :  { %1411 = vperm.xlu0 %2775, %v3130_v60   ;;  %v352_v37 = vmax.f32 %v336_v33, %v341_v29  ;;  %v1536_v33 = vld [vmem:[%s4302_s6 + $0x10] sm:$0xff] }
 0x186   :  { %v343_v32 = vpop.permute.xlu0 %342 }
 0x187   :  { %2757 = vset.pattern.permute.xlu1 %v2813_v22  ;;  %v353_v38 = vmax.f32 %v337_v34, %v343_v32 }
 0x188   :  { %1191 = vperm.xlu1 %2757, %v3114_v58   ;;  %v357_v35 = vpop.permute.xlu1 %356 }
 0x189   :  { %1419 = vperm.xlu0 %2775, %v3162_v19   ;;  %v368_v41 = vmax.f32 %v352_v37, %v357_v35  ;;  %v1483_v35 = vld [vmem:[%s4303_s5 + $0x28] sm:$0xff] }
 0x18a   :  { %v359_v39 = vpop.permute.xlu0 %358  ;;  %v1539_v37 = vld [vmem:[%s4302_s6 + $0x28] sm:$0xff] }
 0x18b   :  { %v369_v43 = vmax.f32 %v353_v38, %v359_v39 }
 0x18c   :  { %1195 = vperm.xlu1 %2757, %v3122_v59  }
 0x18d   :  { %v404_v40 = vpack.c.bf16 %v369_v43, %v368_v41  ;;  %1423 = vperm.xlu0 %2775, %v3149_v18  }
 0x18f   :  { %v406_v42 = vunpack.c.l.bf16 %v404_v40  ;;  %v407_v44 = vunpack.c.h.bf16 %v404_v40 }
 0x190   :  { %2758 = vset.pattern.permute.xlu1 %v2812_v20 }
 0x191   :  { %999 = vperm.xlu1 %2758, %v3142_v16   ;;  %2619 = vmatprep.mubr.msk.f32.mxu1 %vm299_vm2, %v406_v42  ;;  %v410_v46 = vsub.f32 %v368_v41, %v406_v42  ;;  %v411_v48 = vsub.f32 %v369_v43, %v407_v44 }
 0x192   :  { %2620 = vmatmul.mubr.msk.f32.vlgmr.msra.gmra.mxu1 %vm299_vm2, %v407_v44  ;;  %2782 = vset.pattern.permute.xlu0 %v2803_v4 }
 0x193   :  { %2599 = vmatprep.mubr.msk.f32.mxu0 %vm299_vm2, %v410_v46  ;;  %859 = vperm.xlu0 %2782, %v3122_v59  }
 0x194   :  { %2600 = vmatmul.mubr.msk.f32.vlgmr.msra.gmra.mxu0 %vm299_vm2, %v411_v48  ;;  %v313_v49 = vpop.permute.xlu1 %312 }
 0x195   :  { %2759 = vset.pattern.permute.xlu1 %v2814_v23  ;;  %v322_v54 = vmax.f32 %v3092_v12, %v313_v49 }
 0x196   :  { %1119 = vperm.xlu1 %2759, %v3137_v61  }
 0x197   :  { %867 = vperm.xlu0 %2782, %v3130_v60  }
 0x198   :  { %v315_v50 = vpop.permute.xlu0 %314  ;;  %v329_v51 = vpop.permute.xlu1 %328 }
 0x199   :  { %v323_v56 = vmax.f32 %v3097_v14, %v315_v50  ;;  %v338_v17 = vmax.f32 %v322_v54, %v329_v51 }
 0x19a   :  { %1123 = vperm.xlu1 %2759, %v3130_v60  }
 0x19b   :  { %883 = vperm.xlu0 %2782, %v3186_v21  }
 0x19c   :  { %v331_v52 = vpop.permute.xlu0 %330  ;;  %v345_v53 = vpop.permute.xlu1 %344 }
 0x19d   :  { %v339_v55 = vmax.f32 %v323_v56, %v331_v52  ;;  %v354_v2 = vmax.f32 %v338_v17, %v345_v53 }
 0x19e   :  { %2761 = vset.pattern.permute.xlu1 %v2804_v5 }
 0x19f   :  { %931 = vperm.xlu1 %2761, %v3186_v21   ;;  %2790 = vset.pattern.permute.xlu0 %v2817_v57 }
 0x1a0   :  { %v347_v62 = vpop.permute.xlu0 %346  ;;  %1063 = vperm.xlu0 %2790, %v3114_v58   ;;  %v361_v63 = vpop.permute.xlu1 %360 }
 0x1a1   :  { %v355_v3 = vmax.f32 %v339_v55, %v347_v62  ;;  %v370_v6 = vmax.f32 %v354_v2, %v361_v63 }
 0x1a3   :  { %2762 = vset.pattern.permute.xlu1 %v2813_v22 }
 0x1a4   :  { %v363_v5 = vpop.permute.xlu0 %362  ;;  %1199 = vperm.xlu1 %2762, %v3137_v61   ;;  %1071 = vperm.xlu0 %2790, %v3137_v61  }
 0x1a5   :  { %v371_v7 = vmax.f32 %v355_v3, %v363_v5 }
 0x1a7   :  { %v405_v9 = vpack.c.bf16 %v371_v7, %v370_v6 }
 0x1a8   :  { %2763 = vset.pattern.permute.xlu1 %v2815_v25  ;;  %1079 = vperm.xlu0 %2790, %v3142_v16  }
 0x1a9   :  { %v408_v10 = vunpack.c.l.bf16 %v405_v9  ;;  %v409_v11 = vunpack.c.h.bf16 %v405_v9  ;;  %1319 = vperm.xlu1 %2763, %v3114_v58  }
 0x1ab   :  { %v413_v12 = vsub.f32 %v371_v7, %v409_v11  ;;  %2622 = vmatprep.mubr.msk.f32.mxu1 %vm299_vm2, %v408_v10  ;;  %v412_v13 = vsub.f32 %v370_v6, %v408_v10 }
 0x1ac   :  { %2623 = vmatmul.mubr.msk.f32.gmra.mxu1 %vm299_vm2, %v409_v11  ;;  %1087 = vperm.xlu0 %2790, %v3149_v18  }
 0x1ad   :  { %1323 = vperm.xlu1 %2763, %v3122_v59   ;;  %2602 = vmatprep.mubr.msk.f32.mxu0 %vm299_vm2, %v412_v13  ;;  %v3247_v14 = vpop.permute.xlu1 %695 }
 0x1ae   :  { %2603 = vmatmul.mubr.msk.f32.gmra.mxu0 %vm299_vm2, %v413_v12  ;;  %vm2063_vm2 = vcmask 113664  }
 0x1b0   :  { %2794 = vset.pattern.permute.xlu0 %v4313_v1 }
 0x1b1   :  { %2765 = vset.pattern.permute.xlu1 %v2812_v20  ;;  %1283 = vperm.xlu0 %2794, %v3130_v60   ;;  %v3324_v40 = vpop.permute.xlu0 %699 }
 0x1b2   :  { %1011 = vperm.xlu1 %2765, %v3186_v21   ;;  %v3254_v24 = vpop.permute.xlu1 %775 }
 0x1b5   :  { %1291 = vperm.xlu0 %2794, %v3162_v19   ;;  %v3332_v46 = vpop.permute.xlu0 %707 }
 0x1b6   :  { %2766 = vset.pattern.permute.xlu1 %v2814_v23  ;;  %v3258_v26 = vpop.permute.xlu1 %779 }
 0x1b7   :  { %1127 = vperm.xlu1 %2766, %v3142_v16  }
 0x1b9   :  { %1299 = vperm.xlu0 %2794, %v3186_v21   ;;  %v3338_v49 = vpop.permute.xlu0 %711 }
 0x1bb   :  { %2767 = vset.pattern.permute.xlu1 %v2816_v30  ;;  %v3263_v27 = vpop.permute.xlu1 %703 }
 0x1bc   :  { %1399 = vperm.xlu1 %2767, %v3114_v58  }
 0x1bd   :  { %2799 = vset.pattern.permute.xlu0 %v4316_v8  ;;  %v3344_v50 = vpop.permute.xlu0 %719 }
 0x1be   :  { %640 = vperm.xlu0 %2799, %v3114_v58  }
 0x1c0   :  { %1403 = vperm.xlu1 %2767, %v3122_v59   ;;  %v3269_v20 = vpop.permute.xlu1 %783 }
 0x1c2   :  { %655 = vperm.xlu0 %2799, %v3130_v60   ;;  %v3353_v52 = vpop.permute.xlu0 %787 }
 0x1c4   :  { %2768 = vset.pattern.permute.xlu1 %v2813_v22 }
 0x1c5   :  { %1207 = vperm.xlu1 %2768, %v3142_v16   ;;  %v3274_v29 = vpop.permute.xlu1 %903 }
 0x1c6   :  { %660 = vperm.xlu0 %2799, %v3142_v16   ;;  %v3359_v54 = vpop.permute.xlu0 %795 }
 0x1c9   :  { %2770 = vset.pattern.permute.xlu1 %v2815_v25  ;;  %v3278_v0 = vpop.permute.xlu1 %907 }
 0x1ca   :  { %1327 = vperm.xlu1 %2770, %v3137_v61   ;;  %675 = vperm.xlu0 %2799, %v3186_v21   ;;  %v3365_v62 = vpop.permute.xlu0 %799 }
 0x1ce   :  { %1331 = vperm.xlu1 %2770, %v3130_v60   ;;  %v3286_v32 = vpop.permute.xlu1 %715  ;;  %1544 = vperm.xlu0 %2799, %v1534_v31  }
 0x1cf   :  { %v3371_v55 = vpop.permute.xlu0 %923 }
 0x1d2   :  { %2771 = vset.pattern.permute.xlu1 %v2814_v23  ;;  %1554 = vperm.xlu0 %2799, %v1536_v33   ;;  %v1485_v23 = vld [vmem:[%s4303_s5 + $0x38] sm:$0xff] }
 0x1d3   :  { %1139 = vperm.xlu1 %2771, %v3186_v21   ;;  %v3293_v34 = vpop.permute.xlu1 %983  ;;  %v3380_v3 = vpop.permute.xlu0 %927 }
 0x1d6   :  { %1513 = vperm.xlu0 %2799, %v1483_v35  }
 0x1d7   :  { %2772 = vset.pattern.permute.xlu1 %v2816_v30 }
 0x1d8   :  { %1407 = vperm.xlu1 %2772, %v3137_v61   ;;  %v3303_v38 = vpop.permute.xlu1 %791  ;;  %v3386_v6 = vpop.permute.xlu0 %987 }
 0x1da   :  { %1569 = vperm.xlu0 %2799, %v1539_v37  }
 0x1dc   :  { %2773 = vset.pattern.permute.xlu1 %v2813_v22  ;;  %v3392_v9 = vpop.permute.xlu0 %995 }
 0x1dd   :  { %1215 = vperm.xlu1 %2773, %v3149_v18   ;;  %v3310_v39 = vpop.permute.xlu1 %911 }
 0x1de   :  { %1523 = vperm.xlu0 %2799, %v1485_v23  }
 0x1e0   :  { %v3398_v11 = vpop.permute.xlu0 %1003 }
 0x1e1   :  { %1219 = vperm.xlu1 %2773, %v3186_v21   ;;  %v3313_v41 = vpop.permute.xlu1 %915 }
 0x1e5   :  { %2776 = vset.pattern.permute.xlu1 %v2815_v25 }
 0x1e6   :  { %1339 = vperm.xlu1 %2776, %v3162_v19   ;;  %v3317_v43 = vpop.permute.xlu1 %723 }
 0x1ea   :  { %2777 = vset.pattern.permute.xlu1 %v2816_v30 }
 0x1eb   :  { %1415 = vperm.xlu1 %2777, %v3142_v16   ;;  %v3321_v22 = vpop.permute.xlu1 %991 }
 0x1ef   :  { %2778 = vset.pattern.permute.xlu1 %v2815_v25 }
 0x1f0   :  { %1343 = vperm.xlu1 %2778, %v3149_v18   ;;  %v3327_v42 = vpop.permute.xlu1 %1111 }
 0x1f1   :  { %4327 = vst [vmem:[#allocation5_spill] sm:$0xff] %v3327_v42 }
 0x1f4   :  { %1347 = vperm.xlu1 %2778, %v3186_v21   ;;  %v3330_v44 = vpop.permute.xlu1 %1115 }
 0x1f8   :  { %2779 = vset.pattern.permute.xlu1 %v2816_v30 }
 0x1f9   :  { %1427 = vperm.xlu1 %2779, %v3186_v21   ;;  %v3336_v48 = vpop.permute.xlu1 %803 }
 0x1fd   :  { %2780 = vset.pattern.permute.xlu1 %v4316_v8 }
 0x1fe   :  { %645 = vperm.xlu1 %2780, %v3122_v59   ;;  %v3342_v25 = vpop.permute.xlu1 %919 }
 0x202   :  { %650 = vperm.xlu1 %2780, %v3137_v61  }
 0x203   :  { %v3347_v51 = vpop.permute.xlu1 %1191 }
 0x206   :  { %2781 = vset.pattern.permute.xlu1 %v2803_v4 }
 0x207   :  { %855 = vperm.xlu1 %2781, %v3114_v58   ;;  %v3351_v30 = vpop.permute.xlu1 %1195 }
 0x208   :  { %4328 = vst [vmem:[#allocation6_spill] sm:$0xff] %v3351_v30  ;;  %v1538_v30 = vld [vmem:[%s4302_s6 + $0x20] sm:$0xff] }
 0x20b   :  { %2783 = vset.pattern.permute.xlu1 %v4316_v8 }
 0x20c   :  { %665 = vperm.xlu1 %2783, %v3162_v19   ;;  %v3357_v53 = vpop.permute.xlu1 %999 }
 0x210   :  { %2784 = vset.pattern.permute.xlu1 %v2803_v4 }
 0x211   :  { %863 = vperm.xlu1 %2784, %v3137_v61   ;;  %v3363_v56 = vpop.permute.xlu1 %1119 }
 0x212   :  { %4329 = vst [vmem:[#allocation7_spill] sm:$0xff] %v3363_v56 }
 0x215   :  { %2785 = vset.pattern.permute.xlu1 %v2817_v57  ;;  %v3368_v17 = vpop.permute.xlu1 %1123 }
 0x216   :  { %1067 = vperm.xlu1 %2785, %v3122_v59  }
 0x21a   :  { %2786 = vset.pattern.permute.xlu1 %v4316_v8  ;;  %v3374_v63 = vpop.permute.xlu1 %931 }
 0x21b   :  { %670 = vperm.xlu1 %2786, %v3149_v18  }
 0x21f   :  { %2787 = vset.pattern.permute.xlu1 %v2803_v4  ;;  %v3378_v2 = vpop.permute.xlu1 %1199 }
 0x220   :  { %871 = vperm.xlu1 %2787, %v3142_v16  }
 0x224   :  { %875 = vperm.xlu1 %2787, %v3162_v19   ;;  %v3384_v5 = vpop.permute.xlu1 %1319 }
 0x228   :  { %2788 = vset.pattern.permute.xlu1 %v2817_v57  ;;  %v3389_v7 = vpop.permute.xlu1 %1323 }
 0x229   :  { %1075 = vperm.xlu1 %2788, %v3130_v60   ;;  %v3407_v60 = vpop.permute.xlu0 %1007 }
 0x22d   :  { %2789 = vset.pattern.permute.xlu1 %v2803_v4  ;;  %v3395_v10 = vpop.permute.xlu1 %1011  ;;  %v3413_v31 = vpop.permute.xlu0 %1203 }
 0x22e   :  { %879 = vperm.xlu1 %2789, %v3149_v18   ;;  %4331 = vst [vmem:[#allocation9_spill] sm:$0xff] %v3413_v31 }
 0x232   :  { %2791 = vset.pattern.permute.xlu1 %v4313_v1  ;;  %v3401_v12 = vpop.permute.xlu1 %1127 }
 0x233   :  { %4330 = vst [vmem:[#allocation8_spill] sm:$0xff] %v3401_v12  ;;  %1271 = vperm.xlu1 %2791, %v3114_v58   ;;  %v3419_v58 = vpop.permute.xlu0 %1211  ;;  %v4339_v12 = vmov 0  }
 0x234   :  { %4333 = vst [vmem:[#allocation11_spill] sm:$0xff] %v3419_v58  ;;  %v1480_v58 = vld [vmem:[%s4303_s5 + $0x10] sm:$0xff] }
 0x237   :  { %1275 = vperm.xlu1 %2791, %v3122_v59   ;;  %v3405_v13 = vpop.permute.xlu1 %1399  ;;  %v3427_v37 = vpop.permute.xlu0 %1131 }
 0x23b   :  { %2792 = vset.pattern.permute.xlu1 %v2817_v57  ;;  %v3410_v4 = vpop.permute.xlu1 %1403 }
 0x23c   :  { %1083 = vperm.xlu1 %2792, %v3162_v19  }
 0x240   :  { %2793 = vset.pattern.permute.xlu1 %v4313_v1  ;;  %v3416_v33 = vpop.permute.xlu1 %1207 }
 0x241   :  { %4332 = vst [vmem:[#allocation10_spill] sm:$0xff] %v3416_v33  ;;  %1279 = vperm.xlu1 %2793, %v3137_v61   ;;  %v1478_v61 = vld [vmem:[%s4303_s5] sm:$0xff] }
 0x245   :  { %2795 = vset.pattern.permute.xlu1 %v2817_v57  ;;  %v3422_v59 = vpop.permute.xlu1 %1327  ;;  %v3437_v57 = vpop.permute.xlu0 %1135 }
 0x246   :  { %1091 = vperm.xlu1 %2795, %v3186_v21   ;;  %4335 = vst [vmem:[#allocation13_spill] sm:$0xff] %v3437_v57  ;;  %v1479_v21 = vld [vmem:[%s4303_s5 + $0x8] sm:$0xff]  ;;  %v4337_v57 = vmov 9  }
 0x249   :  { %v3425_v35 = vpop.permute.xlu1 %1331 }
 0x24a   :  { %2796 = vset.pattern.permute.xlu1 %v4313_v1  ;;  %v3447_v1 = vpop.permute.xlu0 %1335 }
 0x24b   :  { %1287 = vperm.xlu1 %2796, %v3142_v16   ;;  %v1535_v16 = vld [vmem:[%s4302_s6 + $0x8] sm:$0xff] }
 0x24e   :  { %v3434_v19 = vpop.permute.xlu1 %1139  ;;  %v3452_v45 = vpop.permute.xlu0 %1411 }
 0x24f   :  { %4334 = vst [vmem:[#allocation12_spill] sm:$0xff] %v3434_v19  ;;  %2797 = vset.pattern.permute.xlu1 %v4316_v8 }
 0x250   :  { %1488 = vperm.xlu1 %2797, %v1478_v61  }
 0x252   :  { %v2621_v23 = vpop.f32.mrf.mxu1 }
 0x253   :  { %v3442_v36 = vpop.permute.xlu1 %1407 }
 0x254   :  { %v2601_v28 = vpop.f32.mrf.mxu0  ;;  %1493 = vperm.xlu1 %2797, %v1479_v21   ;;  %v593_v15 = vpop.f32.mrf.mxu1 }
 0x256   :  { %v496_v8 = vpop.f32.mrf.mxu0 }
 0x257   :  { %v594_v47 = vadd.f32 %v593_v15, %v496_v8  ;;  %v3464_v15 = vpop.permute.xlu0 %1419 }
 0x258   :  { %1549 = vperm.xlu1 %2797, %v1535_v16   ;;  %v3449_v61 = vpop.permute.xlu1 %1215 }
 0x259   :  { %4336 = vst [vmem:[#allocation14_spill] sm:$0xff] %v3449_v61  ;;  %616 = vrot.lane.b32.xlu0 %v594_v47, %s2819_s16  ;;  %v1481_v47 = vld [vmem:[%s4303_s5 + $0x18] sm:$0xff] }
 0x25b   :  { %v3474_v16 = vpop.permute.xlu0 %1423 }
 0x25c   :  { %2798 = vset.pattern.permute.xlu1 %v4337_v57  ;;  %v3455_v21 = vpop.permute.xlu1 %1219  ;;  %4340 = vst [vmem:[#allocation16_spill] sm:$0xff] %v3474_v16 }
 0x25d   :  { %4338 = vst [vmem:[#allocation15_spill] sm:$0xff] %v3455_v21  ;;  %1295 = vperm.xlu1 %2798, %v3149_v18   ;;  %v1537_v18 = vld [vmem:[%s4302_s6 + $0x18] sm:$0xff] }
 0x25f   :  { %v3481_v61 = vpop.permute.xlu0 %859 }
 0x260   :  { %4341 = vst [vmem:[#allocation17_spill] sm:$0xff] %v3481_v61  ;;  %v1484_v61 = vld [vmem:[%s4303_s5 + $0x30] sm:$0xff] }
 0x261   :  { %2800 = vset.pattern.permute.xlu1 %v4339_v12  ;;  %v3462_v8 = vpop.permute.xlu1 %1339 }
 0x262   :  { %1498 = vperm.xlu1 %2800, %v1480_v58   ;;  %v1482_v58 = vld [vmem:[%s4303_s5 + $0x20] sm:$0xff] }
 0x263   :  { %v3492_v42 = vpop.permute.xlu0 %867 }
 0x264   :  { %4342 = vst [vmem:[#allocation18_spill] sm:$0xff] %v3492_v42 }
 0x266   :  { %1503 = vperm.xlu1 %2800, %v1481_v47   ;;  %v3469_v57 = vpop.permute.xlu1 %1415 }
 0x267   :  { %v3499_v33 = vpop.permute.xlu0 %883 }
 0x268   :  { %4345 = vst [vmem:[#allocation21_spill] sm:$0xff] %v3499_v33 }
 0x26a   :  { %1559 = vperm.xlu1 %2800, %v1537_v18  }
 0x26b   :  { %v3476_v12 = vpop.permute.xlu1 %1343 }
 0x26c   :  { %v2624_v31 = vpop.f32.mrf.mxu1 }
 0x26e   :  { %v2604_v56 = vpop.f32.mrf.mxu0  ;;  %1508 = vperm.xlu1 %2800, %v1482_v58   ;;  %v603_v18 = vpop.f32.mrf.mxu1 }
 0x26f   :  { %v609_v47 = vadd.f32 %v2624_v31, %v2604_v56  ;;  %v3483_v21 = vpop.permute.xlu1 %1347  ;;  %v599_v56 = vadd.f32 %v2621_v23, %v2601_v28 }
 0x270   :  { %v506_v16 = vpop.f32.mrf.mxu0 }
 0x271   :  { %622 = vrot.lane.b32.xlu0 %v609_v47, %s2819_s16  ;;  %v604_v19 = vadd.f32 %v603_v18, %v506_v16  ;;  %v3504_v16 = vpop.permute.xlu0 %1063 }
 0x272   :  { %1564 = vperm.xlu1 %2800, %v1538_v30   ;;  %4347 = vst [vmem:[#allocation23_spill] sm:$0xff] %v3504_v16 }
 0x274   :  { %v3494_v58 = vpop.permute.xlu1 %1427 }
 0x275   :  { %4343 = vst [vmem:[#allocation19_spill] sm:$0xff] %v3494_v58  ;;  %620 = vrot.lane.b32.xlu0 %v604_v19, %s2819_s16  ;;  %v3508_v18 = vpop.permute.xlu0 %1071 }
 0x276   :  { %1518 = vperm.xlu1 %2800, %v1484_v61   ;;  %4349 = vst [vmem:[#allocation25_spill] sm:$0xff] %v3508_v18 }
 0x279   :  { %v3497_v31 = vpop.permute.xlu1 %645  ;;  %v3512_v58 = vpop.permute.xlu0 %1079 }
 0x27a   :  { %4344 = vst [vmem:[#allocation20_spill] sm:$0xff] %v3497_v31  ;;  %618 = vrot.lane.b32.xlu1 %v599_v56, %s2819_s16  ;;  %4351 = vst [vmem:[#allocation27_spill] sm:$0xff] %v3512_v58 }
 0x27d   :  { %v3502_v30 = vpop.permute.xlu1 %650  ;;  %v3518_v23 = vpop.permute.xlu0 %1087 }
 0x27e   :  { %4346 = vst [vmem:[#allocation22_spill] sm:$0xff] %v3502_v30  ;;  %4354 = vst [vmem:[#allocation30_spill] sm:$0xff] %v3518_v23 }
 0x281   :  { %v3522_v56 = vpop.permute.xlu0 %1283 }
 0x282   :  { %v3506_v47 = vpop.permute.xlu1 %855  ;;  %4356 = vst [vmem:[#allocation32_spill] sm:$0xff] %v3522_v56 }
 0x283   :  { %4348 = vst [vmem:[#allocation24_spill] sm:$0xff] %v3506_v47 }
 0x285   :  { %v3526_v16 = vpop.permute.xlu0 %1291 }
 0x286   :  { %4358 = vst [vmem:[#allocation34_spill] sm:$0xff] %v3526_v16 }
 0x287   :  { %v3510_v42 = vpop.permute.xlu1 %665 }
 0x288   :  { %4350 = vst [vmem:[#allocation26_spill] sm:$0xff] %v3510_v42 }
 0x289   :  { %v3530_v18 = vpop.permute.xlu0 %1299 }
 0x28a   :  { %4360 = vst [vmem:[#allocation36_spill] sm:$0xff] %v3530_v18 }
 0x28c   :  { %v3514_v19 = vpop.permute.xlu1 %863 }
 0x28d   :  { %4352 = vst [vmem:[#allocation28_spill] sm:$0xff] %v3514_v19  ;;  %v3534_v58 = vpop.permute.xlu0 %640 }
 0x291   :  { %v3516_v28 = vpop.permute.xlu1 %1067  ;;  %v3540_v23 = vpop.permute.xlu0 %655 }
 0x292   :  { %4353 = vst [vmem:[#allocation29_spill] sm:$0xff] %v3516_v28  ;;  %4364 = vst [vmem:[#allocation40_spill] sm:$0xff] %v3540_v23 }
 0x295   :  { %v3544_v56 = vpop.permute.xlu0 %660 }
 0x296   :  { %v3520_v61 = vpop.permute.xlu1 %670  ;;  %4366 = vst [vmem:[#allocation42_spill] sm:$0xff] %v3544_v56 }
 0x297   :  { %4355 = vst [vmem:[#allocation31_spill] sm:$0xff] %v3520_v61 }
 0x299   :  { %v3548_v16 = vpop.permute.xlu0 %675 }
 0x29a   :  { %4368 = vst [vmem:[#allocation44_spill] sm:$0xff] %v3548_v16 }
 0x29b   :  { %v3524_v33 = vpop.permute.xlu1 %871 }
 0x29c   :  { %4357 = vst [vmem:[#allocation33_spill] sm:$0xff] %v3524_v33 }
 0x29d   :  { %v3552_v18 = vpop.permute.xlu0 %1544 }
 0x29e   :  { %4370 = vst [vmem:[#allocation46_spill] sm:$0xff] %v3552_v18 }
 0x29f   :  { %v3528_v30 = vpop.permute.xlu1 %875 }
 0x2a0   :  { %4359 = vst [vmem:[#allocation35_spill] sm:$0xff] %v3528_v30 }
 0x2a4   :  { %v3532_v42 = vpop.permute.xlu1 %1075 }
 0x2a5   :  { %4361 = vst [vmem:[#allocation37_spill] sm:$0xff] %v3532_v42 }
 0x2a9   :  { %v3536_v19 = vpop.permute.xlu1 %879 }
 0x2aa   :  { %4362 = vst [vmem:[#allocation38_spill] sm:$0xff] %v3536_v19  ;;  %v3558_v19 = vpop.permute.xlu0 %1554 }
 0x2ab   :  { %4373 = vst [vmem:[#allocation49_spill] sm:$0xff] %v3558_v19 }
 0x2ae   :  { %v3538_v28 = vpop.permute.xlu1 %1271  ;;  %v3562_v23 = vpop.permute.xlu0 %1513 }
 0x2af   :  { %4363 = vst [vmem:[#allocation39_spill] sm:$0xff] %v3538_v28  ;;  %4375 = vst [vmem:[#allocation51_spill] sm:$0xff] %v3562_v23 }
 0x2b2   :  { %v3542_v61 = vpop.permute.xlu1 %1275  ;;  %v3566_v56 = vpop.permute.xlu0 %1569 }
 0x2b3   :  { %4365 = vst [vmem:[#allocation41_spill] sm:$0xff] %v3542_v61  ;;  %4377 = vst [vmem:[#allocation53_spill] sm:$0xff] %v3566_v56 }
 0x2b7   :  { %v3546_v33 = vpop.permute.xlu1 %1083 }
 0x2b8   :  { %4367 = vst [vmem:[#allocation43_spill] sm:$0xff] %v3546_v33 }
 0x2bc   :  { %v3550_v30 = vpop.permute.xlu1 %1279 }
 0x2bd   :  { %4369 = vst [vmem:[#allocation45_spill] sm:$0xff] %v3550_v30  ;;  %v3572_v30 = vpop.permute.xlu0 %1523 }
 0x2be   :  { %4380 = vst [vmem:[#allocation56_spill] sm:$0xff] %v3572_v30 }
 0x2c1   :  { %v3554_v42 = vpop.permute.xlu1 %1091 }
 0x2c2   :  { %4371 = vst [vmem:[#allocation47_spill] sm:$0xff] %v3554_v42 }
 0x2c6   :  { %v3556_v47 = vpop.permute.xlu1 %1287 }
 0x2c7   :  { %4372 = vst [vmem:[#allocation48_spill] sm:$0xff] %v3556_v47 }
 0x2cb   :  { %v3560_v28 = vpop.permute.xlu1 %1488  ;;  %v617_v42 = vpop.permute.xlu0 %616 }
 0x2cc   :  { %4374 = vst [vmem:[#allocation50_spill] sm:$0xff] %v3560_v28 }
 0x2cf   :  { %v3564_v61 = vpop.permute.xlu1 %1493 }
 0x2d0   :  { %4376 = vst [vmem:[#allocation52_spill] sm:$0xff] %v3564_v61 }
 0x2d3   :  { %v3568_v33 = vpop.permute.xlu1 %1549 }
 0x2d4   :  { %4378 = vst [vmem:[#allocation54_spill] sm:$0xff] %v3568_v33 }
 0x2d8   :  { %v3570_v16 = vpop.permute.xlu1 %1295 }
 0x2d9   :  { %4379 = vst [vmem:[#allocation55_spill] sm:$0xff] %v3570_v16 }
 0x2dd   :  { %v3574_v18 = vpop.permute.xlu1 %1498 }
 0x2de   :  { %4381 = vst [vmem:[#allocation57_spill] sm:$0xff] %v3574_v18 }
 0x2e1   :  { %v3576_v47 = vpop.permute.xlu1 %1503 }
 0x2e2   :  { %4382 = vst [vmem:[#allocation58_spill] sm:$0xff] %v3576_v47 }
 0x2e3   :  { %v623_v19 = vpop.permute.xlu0 %622 }
 0x2e5   :  { %v3578_v31 = vpop.permute.xlu1 %1559 }
 0x2e6   :  { %4383 = vst [vmem:[#allocation59_spill] sm:$0xff] %v3578_v31 }
 0x2e7   :  { %v621_v23 = vpop.permute.xlu0 %620 }
 0x2e8   :  { %v631_v61 = vsel %vm628_vm9, 0.0, %v621_v23 }
 0x2e9   :  { %v3582_v56 = vsel %vm633_vm10, %v631_v61, 0.0  ;;  %v3584_v33 = vpop.permute.xlu1 %1508 }
 0x2ed   :  { %v3586_v16 = vpop.permute.xlu1 %1564 }
 0x2f1   :  { %v3588_v30 = vpop.permute.xlu1 %1518 }
 0x2f2   :  { %4384 = vst [vmem:[#allocation60_spill] sm:$0xff] %v3588_v30 }
 0x2f5   :  { %v619_v18 = vpop.permute.xlu1 %618 }
 0x2f6   :  { %v630_v47 = vsel %vm628_vm9, 0.0, %v619_v18  ;;  %v4385_v18 = vld [vmem:[#allocation10_spill] sm:$0xff] }
 0x2f7   :  { %v3592_v28 = vsel %vm633_vm10, %v630_v47, 0.0 }
 0x2f8   :  { %v935_v31 = vmul.f32 %v3278_v0, %v3592_v28  ;;  %v934_v23 = vmul.f32 %v3274_v29, %v3592_v28  ;;  %v1014_v61 = vmul.f32 %v3293_v34, %v3592_v28  ;;  %v1015_v30 = vmul.f32 %v3386_v6, %v3592_v28 }
 0x2f9   :  { %v937_v0 = vmul.f32 %v3313_v41, %v3592_v28  ;;  %v936_v29 = vmul.f32 %v3310_v39, %v3592_v28  ;;  %v1016_v34 = vmul.f32 %v3321_v22, %v3592_v28  ;;  %v1017_v6 = vmul.f32 %v3392_v9, %v3592_v28 }
 0x2fa   :  { %952 = vrot.lane.b32.xlu1 %v935_v31, %s2806_s23  ;;  %950 = vrot.lane.b32.xlu0 %v934_v23, %s2806_s23  ;;  %v939_v41 = vmul.f32 %v3371_v55, %v3592_v28  ;;  %v938_v39 = vmul.f32 %v3342_v25, %v3592_v28  ;;  %v1018_v22 = vmul.f32 %v3357_v53, %v3592_v28  ;;  %v629_v31 = vsel %vm628_vm9, 0.0, %v617_v42  ;;  %v4387_v23 = vld [vmem:[#allocation12_spill] sm:$0xff] }
 0x2fb   :  { %v1019_v9 = vmul.f32 %v3398_v11, %v3592_v28  ;;  %v941_v55 = vmul.f32 %v3374_v63, %v3592_v28  ;;  %v940_v25 = vmul.f32 %v3380_v3, %v3592_v28  ;;  %v1020_v53 = vmul.f32 %v3407_v60, %v3592_v28 }
 0x2fc   :  { %v1021_v11 = vmul.f32 %v3395_v10, %v3592_v28  ;;  %v632_v60 = vsel %vm628_vm9, 0.0, %v623_v19  ;;  %v4386_v19 = vld [vmem:[#allocation5_spill] sm:$0xff] }
 0x2fd   :  { %v3676_v47 = vsel %vm633_vm10, %v632_v60, 0.0  ;;  %v4395_v60 = vld [vmem:[#allocation13_spill] sm:$0xff] }
 0x2fe   :  { %1030 = vrot.lane.b32.xlu1 %v1014_v61, %s2807_s2  ;;  %1032 = vrot.lane.b32.xlu0 %v1015_v30, %s2807_s2  ;;  %v3642_v30 = vsel %vm633_vm10, %v629_v31, 0.0  ;;  %v4388_v61 = vld [vmem:[#allocation6_spill] sm:$0xff] }
 0x2ff   :  { %v726_v42 = vmul.f32 %v3247_v14, %v3642_v30  ;;  %v729_v63 = vmul.f32 %v3332_v46, %v3642_v30  ;;  %v727_v3 = vmul.f32 %v3324_v40, %v3642_v30  ;;  %v808_v10 = vmul.f32 %v3269_v20, %v3642_v30 }
 0x300   :  { %v806_v14 = vmul.f32 %v3254_v24, %v3642_v30  ;;  %v731_v46 = vmul.f32 %v3286_v32, %v3642_v30  ;;  %v807_v40 = vmul.f32 %v3258_v26, %v3642_v30  ;;  %v810_v20 = vmul.f32 %v3303_v38, %v3642_v30 }
 0x301   :  { %v728_v24 = vmul.f32 %v3263_v27, %v3642_v30  ;;  %v733_v32 = vmul.f32 %v3317_v43, %v3642_v30  ;;  %v809_v26 = vmul.f32 %v3353_v52, %v3642_v30  ;;  %v1350_v38 = vmul.f32 %v3384_v5, %v3676_v47 }
 0x302   :  { %956 = vrot.lane.b32.xlu1 %v937_v0, %s2806_s23  ;;  %954 = vrot.lane.b32.xlu0 %v936_v29, %s2806_s23  ;;  %v730_v27 = vmul.f32 %v3338_v49, %v3642_v30  ;;  %v1431_v43 = vmul.f32 %v3410_v4, %v3676_v47  ;;  %v811_v52 = vmul.f32 %v3359_v54, %v3642_v30  ;;  %v4389_v0 = vld [vmem:[#allocation15_spill] sm:$0xff] }
 0x303   :  { %v1352_v5 = vmul.f32 %v3422_v59, %v3676_v47  ;;  %v732_v49 = vmul.f32 %v3344_v50, %v3642_v30  ;;  %v1433_v4 = vmul.f32 %v3452_v45, %v3676_v47  ;;  %v812_v54 = vmul.f32 %v3365_v62, %v3642_v30 }
 0x304   :  { %v1355_v59 = vmul.f32 %v3462_v8, %v3676_v47  ;;  %v813_v50 = vmul.f32 %v3336_v48, %v3642_v30  ;;  %v1435_v45 = vmul.f32 %v3464_v15, %v3676_v47  ;;  %v1351_v62 = vmul.f32 %v3389_v7, %v3676_v47 }
 0x305   :  { %v1357_v8 = vmul.f32 %v3483_v21, %v3676_v47  ;;  %v1430_v48 = vmul.f32 %v3405_v13, %v3676_v47  ;;  %v1143_v15 = vmul.f32 %v3330_v44, %v3582_v56  ;;  %v1353_v7 = vmul.f32 %v3425_v35, %v3676_v47 }
 0x306   :  { %1034 = vrot.lane.b32.xlu1 %v1016_v34, %s2807_s2  ;;  %1036 = vrot.lane.b32.xlu0 %v1017_v6, %s2807_s2  ;;  %v1222_v21 = vmul.f32 %v3347_v51, %v3582_v56  ;;  %v1432_v13 = vmul.f32 %v3442_v36, %v3676_v47  ;;  %v1145_v44 = vmul.f32 %v3368_v17, %v3582_v56  ;;  %v1541_v34 = vld [vmem:[%s4302_s6 + $0x38] sm:$0xff]  ;;  %v4390_v6 = vld [vmem:[#allocation7_spill] sm:$0xff] }
 0x307   :  { %v1354_v35 = vmul.f32 %v3447_v1, %v3676_v47  ;;  %v1224_v51 = vmul.f32 %v3378_v2, %v3582_v56  ;;  %v1434_v36 = vmul.f32 %v3469_v57, %v3676_v47  ;;  %v1147_v17 = vmul.f32 %v3427_v37, %v3582_v56 }
 0x308   :  { %v1356_v1 = vmul.f32 %v3476_v12, %v3676_v47  ;;  %v1226_v2 = vmul.f32 %v4385_v18, %v3582_v56  ;;  %v1142_v57 = vmul.f32 %v4386_v19, %v3582_v56  ;;  %v1149_v37 = vmul.f32 %v4387_v23, %v3582_v56 }
 0x309   :  { %v1223_v12 = vmul.f32 %v4388_v61, %v3582_v56  ;;  %v1229_v29 = vmul.f32 %v4389_v0, %v3582_v56  ;;  %v4400_v61 = vld [vmem:[#allocation17_spill] sm:$0xff] }
 0x30a   :  { %960 = vrot.lane.b32.xlu1 %v939_v41, %s2806_s23  ;;  %958 = vrot.lane.b32.xlu0 %v938_v39, %s2806_s23  ;;  %v1144_v41 = vmul.f32 %v4390_v6, %v3582_v56 }
 0x30e   :  { %1038 = vrot.lane.b32.xlu1 %v1018_v22, %s2807_s2  ;;  %1040 = vrot.lane.b32.xlu0 %v1019_v9, %s2807_s2  ;;  %v4391_v9 = vld [vmem:[#allocation9_spill] sm:$0xff] }
 0x312   :  { %964 = vrot.lane.b32.xlu1 %v941_v55, %s2806_s23  ;;  %962 = vrot.lane.b32.xlu0 %v940_v25, %s2806_s23  ;;  %v1225_v55 = vmul.f32 %v4391_v9, %v3582_v56  ;;  %v4392_v25 = vld [vmem:[#allocation19_spill] sm:$0xff] }
 0x313   :  { %v1437_v31 = vmul.f32 %v4392_v25, %v3676_v47  ;;  %v4404_v25 = vld [vmem:[#allocation40_spill] sm:$0xff] }
 0x316   :  { %1042 = vrot.lane.b32.xlu1 %v1020_v53, %s2807_s2  ;;  %1044 = vrot.lane.b32.xlu0 %v1021_v11, %s2807_s2 }
 0x31a   :  { %742 = vrot.lane.b32.xlu1 %v726_v42, %s2806_s23  ;;  %748 = vrot.lane.b32.xlu0 %v729_v63, %s2806_s23  ;;  %v4393_v42 = vld [vmem:[#allocation8_spill] sm:$0xff] }
 0x31b   :  { %v1146_v63 = vmul.f32 %v4393_v42, %v3582_v56 }
 0x31e   :  { %744 = vrot.lane.b32.xlu1 %v727_v3, %s2806_s23  ;;  %826 = vrot.lane.b32.xlu0 %v808_v10, %s2807_s2 }
 0x322   :  { %822 = vrot.lane.b32.xlu1 %v806_v14, %s2807_s2  ;;  %752 = vrot.lane.b32.xlu0 %v731_v46, %s2806_s23  ;;  %v4394_v14 = vld [vmem:[#allocation11_spill] sm:$0xff] }
 0x323   :  { %v1227_v46 = vmul.f32 %v4394_v14, %v3582_v56 }
 0x326   :  { %824 = vrot.lane.b32.xlu1 %v807_v40, %s2807_s2  ;;  %830 = vrot.lane.b32.xlu0 %v810_v20, %s2807_s2 }
 0x32a   :  { %746 = vrot.lane.b32.xlu1 %v728_v24, %s2806_s23  ;;  %756 = vrot.lane.b32.xlu0 %v733_v32, %s2806_s23  ;;  %v1148_v24 = vmul.f32 %v4395_v60, %v3582_v56 }
 0x32e   :  { %828 = vrot.lane.b32.xlu1 %v809_v26, %s2807_s2  ;;  %1366 = vrot.lane.b32.xlu0 %v1350_v38, %s2806_s23  ;;  %v4396_v38 = vld [vmem:[#allocation14_spill] sm:$0xff] }
 0x332   :  { %750 = vrot.lane.b32.xlu1 %v730_v27, %s2806_s23  ;;  %1448 = vrot.lane.b32.xlu0 %v1431_v43, %s2807_s2  ;;  %v1228_v27 = vmul.f32 %v4396_v38, %v3582_v56  ;;  %v1540_v43 = vld [vmem:[%s4302_s6 + $0x30] sm:$0xff]  ;;  %s2820_s6 = smov 2  }
 0x336   :  { %832 = vrot.lane.b32.xlu1 %v811_v52, %s2807_s2  ;;  %1370 = vrot.lane.b32.xlu0 %v1352_v5, %s2806_s23 }
 0x33a   :  { %754 = vrot.lane.b32.xlu1 %v732_v49, %s2806_s23  ;;  %1452 = vrot.lane.b32.xlu0 %v1433_v4, %s2807_s2 }
 0x33e   :  { %834 = vrot.lane.b32.xlu1 %v812_v54, %s2807_s2  ;;  %1376 = vrot.lane.b32.xlu0 %v1355_v59, %s2806_s23  ;;  %v4397_v54 = vld [vmem:[#allocation16_spill] sm:$0xff] }
 0x33f   :  { %v1436_v59 = vmul.f32 %v4397_v54, %v3676_v47  ;;  %v4406_v54 = vld [vmem:[#allocation28_spill] sm:$0xff] }
 0x342   :  { %836 = vrot.lane.b32.xlu1 %v813_v50, %s2807_s2  ;;  %1456 = vrot.lane.b32.xlu0 %v1435_v45, %s2807_s2 }
 0x346   :  { %1368 = vrot.lane.b32.xlu1 %v1351_v62, %s2806_s23  ;;  %1380 = vrot.lane.b32.xlu0 %v1357_v8, %s2806_s23 }
 0x34a   :  { %1446 = vrot.lane.b32.xlu1 %v1430_v48, %s2807_s2  ;;  %1160 = vrot.lane.b32.xlu0 %v1143_v15, %s2806_s23 }
 0x34e   :  { %1372 = vrot.lane.b32.xlu1 %v1353_v7, %s2806_s23  ;;  %1238 = vrot.lane.b32.xlu0 %v1222_v21, %s2807_s2  ;;  %v678_v7 = vmul.f32 %v3534_v58, %v3642_v30  ;;  %v4401_v58 = vld [vmem:[#allocation22_spill] sm:$0xff] }
 0x34f   :  { %v680_v0 = vmul.f32 %v4401_v58, %v3642_v30 }
 0x352   :  { %1450 = vrot.lane.b32.xlu1 %v1432_v13, %s2807_s2  ;;  %1164 = vrot.lane.b32.xlu0 %v1145_v44, %s2806_s23 }
 0x356   :  { %1374 = vrot.lane.b32.xlu1 %v1354_v35, %s2806_s23  ;;  %1242 = vrot.lane.b32.xlu0 %v1224_v51, %s2807_s2  ;;  %v4398_v35 = vld [vmem:[#allocation20_spill] sm:$0xff] }
 0x357   :  { %v679_v51 = vmul.f32 %v4398_v35, %v3642_v30 }
 0x35a   :  { %1454 = vrot.lane.b32.xlu1 %v1434_v36, %s2807_s2  ;;  %1168 = vrot.lane.b32.xlu0 %v1147_v17, %s2806_s23  ;;  %v4399_v17 = vld [vmem:[#allocation24_spill] sm:$0xff] }
 0x35e   :  { %1378 = vrot.lane.b32.xlu1 %v1356_v1, %s2806_s23  ;;  %1246 = vrot.lane.b32.xlu0 %v1226_v2, %s2807_s2  ;;  %v886_v1 = vmul.f32 %v4399_v17, %v3592_v28 }
 0x362   :  { %1158 = vrot.lane.b32.xlu1 %v1142_v57, %s2806_s23  ;;  %1172 = vrot.lane.b32.xlu0 %v1149_v37, %s2806_s23 }
 0x366   :  { %1240 = vrot.lane.b32.xlu1 %v1223_v12, %s2807_s2  ;;  %1252 = vrot.lane.b32.xlu0 %v1229_v29, %s2807_s2  ;;  %v887_v12 = vmul.f32 %v4400_v61, %v3592_v28 }
 0x36a   :  { %1162 = vrot.lane.b32.xlu1 %v1144_v41, %s2806_s23  ;;  %1579 = vperm.xlu0 %2799, %v1541_v34   ;;  %v4402_v34 = vld [vmem:[#allocation44_spill] sm:$0xff]  ;;  %v4403_v41 = vld [vmem:[#allocation23_spill] sm:$0xff] }
 0x36b   :  { %v685_v6 = vmul.f32 %v4402_v34, %v3642_v30  ;;  %v1094_v9 = vmul.f32 %v4403_v41, %v3582_v56 }
 0x36c   :  { %v953_v39 = vpop.permute.xlu1 %952  ;;  %v951_v22 = vpop.permute.xlu0 %950 }
 0x36e   :  { %1244 = vrot.lane.b32.xlu1 %v1225_v55, %s2807_s2  ;;  %1460 = vrot.lane.b32.xlu0 %v1437_v31, %s2807_s2  ;;  %v681_v31 = vmul.f32 %v4404_v25, %v3642_v30 }
 0x370   :  { %v1031_v53 = vpop.permute.xlu1 %1030  ;;  %v1033_v11 = vpop.permute.xlu0 %1032 }
 0x372   :  { %1166 = vrot.lane.b32.xlu1 %v1146_v63, %s2806_s23 }
 0x374   :  { %v3785_v3 = vpop.permute.xlu1 %956  ;;  %v3787_v10 = vpop.permute.xlu0 %954 }
 0x376   :  { %1248 = vrot.lane.b32.xlu1 %v1227_v46, %s2807_s2 }
 0x378   :  { %v3792_v40 = vpop.permute.xlu1 %1034  ;;  %v3794_v20 = vpop.permute.xlu0 %1036 }
 0x37a   :  { %1170 = vrot.lane.b32.xlu1 %v1148_v24, %s2806_s23  ;;  %v4405_v24 = vld [vmem:[#allocation29_spill] sm:$0xff] }
 0x37b   :  { %v1095_v38 = vmul.f32 %v4405_v24, %v3582_v56 }
 0x37c   :  { %v3799_v32 = vpop.permute.xlu1 %960  ;;  %v3801_v26 = vpop.permute.xlu0 %958 }
 0x37e   :  { %1250 = vrot.lane.b32.xlu1 %v1228_v27, %s2807_s2 }
 0x380   :  { %v3809_v52 = vpop.permute.xlu1 %1038  ;;  %v3811_v5 = vpop.permute.xlu0 %1040 }
 0x382   :  { %1574 = vperm.xlu1 %2800, %v1540_v43  }
 0x384   :  { %v3813_v49 = vpop.permute.xlu1 %964  ;;  %v3815_v4 = vpop.permute.xlu0 %962 }
 0x386   :  { %1458 = vrot.lane.b32.xlu1 %v1436_v59, %s2807_s2  ;;  %v888_v59 = vmul.f32 %v4406_v54, %v3592_v28 }
 0x388   :  { %v3820_v50 = vpop.permute.xlu1 %1042  ;;  %v3822_v45 = vpop.permute.xlu0 %1044 }
 0x38c   :  { %v743_v62 = vpop.permute.xlu1 %742  ;;  %v749_v8 = vpop.permute.xlu0 %748 }
 0x38d   :  { %v766_v21 = vadd.f32 %v743_v62, %v678_v7  ;;  %v769_v27 = vadd.f32 %v749_v8, %v681_v31  ;;  %v4413_v31 = vld [vmem:[#allocation35_spill] sm:$0xff] }
 0x390   :  { %v745_v48 = vpop.permute.xlu1 %744  ;;  %v827_v15 = vpop.permute.xlu0 %826 }
 0x391   :  { %v767_v18 = vadd.f32 %v745_v48, %v679_v51 }
 0x394   :  { %v823_v13 = vpop.permute.xlu1 %822  ;;  %v753_v44 = vpop.permute.xlu0 %752 }
 0x395   :  { %v846_v36 = vadd.f32 %v823_v13, %v766_v21 }
 0x397   :  { %v894_v2 = vadd.f32 %v886_v1, %v846_v36  ;;  %v4408_v36 = vld [vmem:[#allocation42_spill] sm:$0xff] }
 0x398   :  { %v825_v19 = vpop.permute.xlu1 %824  ;;  %v831_v57 = vpop.permute.xlu0 %830  ;;  %v682_v17 = vmul.f32 %v4408_v36, %v3642_v30 }
 0x399   :  { %v974_v23 = vadd.f32 %v951_v22, %v894_v2  ;;  %v847_v37 = vadd.f32 %v825_v19, %v767_v18 }
 0x39b   :  { %v895_v29 = vadd.f32 %v887_v12, %v847_v37  ;;  %v1054_v55 = vadd.f32 %v1031_v53, %v974_v23  ;;  %v4410_v23 = vld [vmem:[#allocation25_spill] sm:$0xff] }
 0x39c   :  { %v747_v42 = vpop.permute.xlu1 %746  ;;  %v757_v22 = vpop.permute.xlu0 %756  ;;  %v1096_v37 = vmul.f32 %v4410_v23, %v3582_v56  ;;  %v4411_v12 = vld [vmem:[#allocation33_spill] sm:$0xff] }
 0x39d   :  { %v975_v63 = vadd.f32 %v953_v39, %v895_v29  ;;  %v768_v14 = vadd.f32 %v747_v42, %v680_v0  ;;  %v773_v46 = vadd.f32 %v757_v22, %v685_v6  ;;  %v3840_v60 = vadd.f32 %v1094_v9, %v1054_v55  ;;  %v4407_v39 = vld [vmem:[#allocation18_spill] sm:$0xff]  ;;  %v4412_v0 = vld [vmem:[#allocation37_spill] sm:$0xff] }
 0x39e   :  { %v889_v13 = vmul.f32 %v4407_v39, %v3592_v28  ;;  %v890_v58 = vmul.f32 %v4411_v12, %v3592_v28  ;;  %v4417_v39 = vld [vmem:[#allocation38_spill] sm:$0xff] }
 0x39f   :  { %v848_v43 = vadd.f32 %v827_v15, %v768_v14  ;;  %v1055_v62 = vadd.f32 %v1033_v11, %v975_v63  ;;  %v4409_v15 = vld [vmem:[#allocation26_spill] sm:$0xff]  ;;  %v4414_v63 = vld [vmem:[#allocation31_spill] sm:$0xff] }
 0x3a0   :  { %v829_v53 = vpop.permute.xlu1 %828  ;;  %v3846_v48 = vpop.permute.xlu0 %1366  ;;  %v683_v1 = vmul.f32 %v4409_v15, %v3642_v30  ;;  %v684_v14 = vmul.f32 %v4414_v63, %v3642_v30 }
 0x3a1   :  { %v896_v7 = vadd.f32 %v888_v59, %v848_v43  ;;  %v849_v21 = vadd.f32 %v829_v53, %v769_v27  ;;  %v3850_v35 = vadd.f32 %v1095_v38, %v1055_v62  ;;  %v4415_v27 = vld [vmem:[#allocation27_spill] sm:$0xff] }
 0x3a2   :  { %v771_v29 = vadd.f32 %v753_v44, %v683_v1  ;;  %v1098_v43 = vmul.f32 %v4415_v27, %v3582_v56  ;;  %v4416_v59 = vld [vmem:[#allocation43_spill] sm:$0xff] }
 0x3a3   :  { %v897_v51 = vadd.f32 %v889_v13, %v849_v21  ;;  %v976_v8 = vadd.f32 %v3787_v10, %v896_v7  ;;  %v1097_v10 = vmul.f32 %v4412_v0, %v3582_v56  ;;  %v1099_v62 = vmul.f32 %v4416_v59, %v3582_v56 }
 0x3a4   :  { %v751_v11 = vpop.permute.xlu1 %750  ;;  %v3857_v18 = vpop.permute.xlu0 %1448 }
 0x3a5   :  { %v977_v2 = vadd.f32 %v3785_v3, %v897_v51  ;;  %v770_v19 = vadd.f32 %v751_v11, %v682_v17  ;;  %v1056_v61 = vadd.f32 %v3792_v40, %v976_v8  ;;  %v891_v40 = vmul.f32 %v4413_v31, %v3592_v28  ;;  %v4419_v11 = vld [vmem:[#allocation30_spill] sm:$0xff] }
 0x3a7   :  { %v850_v34 = vadd.f32 %v831_v57, %v770_v19  ;;  %v1057_v6 = vadd.f32 %v3794_v20, %v977_v2  ;;  %v3868_v41 = vadd.f32 %v1096_v37, %v1056_v61  ;;  %v1100_v2 = vmul.f32 %v4419_v11, %v3582_v56 }
 0x3a8   :  { %v833_v9 = vpop.permute.xlu1 %832  ;;  %v3870_v3 = vpop.permute.xlu0 %1370 }
 0x3a9   :  { %v898_v55 = vadd.f32 %v890_v58, %v850_v34  ;;  %v851_v25 = vadd.f32 %v833_v9, %v771_v29  ;;  %v3874_v42 = vadd.f32 %v1097_v10, %v1057_v6  ;;  %v4420_v58 = vld [vmem:[#allocation47_spill] sm:$0xff] }
 0x3ab   :  { %v899_v22 = vadd.f32 %v891_v40, %v851_v25  ;;  %v978_v44 = vadd.f32 %v3801_v26, %v898_v55 }
 0x3ac   :  { %v755_v57 = vpop.permute.xlu1 %754  ;;  %v3879_v20 = vpop.permute.xlu0 %1452 }
 0x3ad   :  { %v979_v24 = vadd.f32 %v3799_v32, %v899_v22  ;;  %v772_v38 = vadd.f32 %v755_v57, %v684_v14  ;;  %v1058_v54 = vadd.f32 %v3809_v52, %v978_v44  ;;  %v892_v32 = vmul.f32 %v4417_v39, %v3592_v28  ;;  %v4421_v14 = vld [vmem:[#allocation39_spill] sm:$0xff] }
 0x3ae   :  { %v1302_v44 = vmul.f32 %v4421_v14, %v3676_v47  ;;  %v4430_v14 = vld [vmem:[#allocation48_spill] sm:$0xff] }
 0x3af   :  { %v1059_v53 = vadd.f32 %v3811_v5, %v979_v24  ;;  %v3888_v7 = vadd.f32 %v1098_v43, %v1058_v54  ;;  %v4418_v5 = vld [vmem:[#allocation21_spill] sm:$0xff] }
 0x3b0   :  { %v835_v30 = vpop.permute.xlu1 %834  ;;  %v3890_v26 = vpop.permute.xlu0 %1376  ;;  %v893_v15 = vmul.f32 %v4418_v5, %v3592_v28 }
 0x3b1   :  { %v852_v21 = vadd.f32 %v835_v30, %v772_v38  ;;  %v3894_v13 = vadd.f32 %v1099_v62, %v1059_v53  ;;  %v4422_v38 = vld [vmem:[#allocation41_spill] sm:$0xff]  ;;  %v4423_v53 = vld [vmem:[#allocation36_spill] sm:$0xff] }
 0x3b2   :  { %v1303_v27 = vmul.f32 %v4422_v38, %v3676_v47  ;;  %v1309_v30 = vmul.f32 %v4423_v53, %v3676_v47 }
 0x3b3   :  { %v900_v51 = vadd.f32 %v892_v32, %v852_v21 }
 0x3b4   :  { %v837_v36 = vpop.permute.xlu1 %836  ;;  %v3896_v17 = vpop.permute.xlu0 %1456 }
 0x3b5   :  { %v980_v52 = vadd.f32 %v3815_v4, %v900_v51  ;;  %v853_v8 = vadd.f32 %v837_v36, %v773_v46  ;;  %v1101_v4 = vmul.f32 %v4420_v58, %v3582_v56 }
 0x3b7   :  { %v901_v1 = vadd.f32 %v893_v15, %v853_v8  ;;  %v1060_v19 = vadd.f32 %v3820_v50, %v980_v52  ;;  %v4424_v8 = vld [vmem:[#allocation45_spill] sm:$0xff] }
 0x3b8   :  { %v1369_v23 = vpop.permute.xlu1 %1368  ;;  %v3904_v37 = vpop.permute.xlu0 %1380  ;;  %v1304_v5 = vmul.f32 %v4424_v8, %v3676_v47 }
 0x3b9   :  { %v981_v61 = vadd.f32 %v3813_v49, %v901_v1  ;;  %v3907_v12 = vadd.f32 %v1100_v2, %v1060_v19  ;;  %v4425_v2 = vld [vmem:[#allocation50_spill] sm:$0xff] }
 0x3bb   :  { %v1061_v46 = vadd.f32 %v3822_v45, %v981_v61 }
 0x3bc   :  { %v1447_v0 = vpop.permute.xlu1 %1446  ;;  %v1161_v28 = vpop.permute.xlu0 %1160 }
 0x3bd   :  { %v1109_v10 = vadd.f32 %v1101_v4, %v1061_v46  ;;  %v1183_v63 = vadd.f32 %v1161_v28, %v3850_v35  ;;  %v4427_v4 = vld [vmem:[#allocation52_spill] sm:$0xff]  ;;  %v4428_v28 = vld [vmem:[#allocation46_spill] sm:$0xff] }
 0x3c0   :  { %v1373_v29 = vpop.permute.xlu1 %1372  ;;  %v1239_v34 = vpop.permute.xlu0 %1238 }
 0x3c4   :  { %v1451_v6 = vpop.permute.xlu1 %1450  ;;  %v1165_v9 = vpop.permute.xlu0 %1164 }
 0x3c5   :  { %v1185_v15 = vadd.f32 %v1165_v9, %v3874_v42  ;;  %v4429_v9 = vld [vmem:[#allocation54_spill] sm:$0xff] }
 0x3c8   :  { %v3912_v50 = vpop.permute.xlu1 %1374  ;;  %v1243_v55 = vpop.permute.xlu0 %1242 }
 0x3cc   :  { %v3914_v25 = vpop.permute.xlu1 %1454  ;;  %v1169_v49 = vpop.permute.xlu0 %1168 }
 0x3d0   :  { %v3916_v31 = vpop.permute.xlu1 %1378  ;;  %v1247_v40 = vpop.permute.xlu0 %1246 }
 0x3d4   :  { %v1159_v22 = vpop.permute.xlu1 %1158  ;;  %v1173_v56 = vpop.permute.xlu0 %1172 }
 0x3d5   :  { %v1182_v45 = vadd.f32 %v1159_v22, %v3840_v60  ;;  %v1189_v24 = vadd.f32 %v1173_v56, %v1109_v10 }
 0x3d7   :  { %v1262_v57 = vadd.f32 %v1239_v34, %v1182_v45 }
 0x3d8   :  { %v1241_v43 = vpop.permute.xlu1 %1240  ;;  %v1253_v54 = vpop.permute.xlu0 %1252 }
 0x3d9   :  { %v1310_v59 = vadd.f32 %v1302_v44, %v1262_v57  ;;  %v1263_v62 = vadd.f32 %v1241_v43, %v1183_v63  ;;  %v1269_v21 = vadd.f32 %v1253_v54, %v1189_v24  ;;  %v1306_v44 = vmul.f32 %v4430_v14, %v3676_v47 }
 0x3db   :  { %v1390_v60 = vadd.f32 %v3846_v48, %v1310_v59  ;;  %v1311_v39 = vadd.f32 %v1303_v27, %v1263_v62  ;;  %v3927_v35 = vadd.f32 %v1309_v30, %v1269_v21  ;;  %v4426_v48 = vld [vmem:[#allocation32_spill] sm:$0xff]  ;;  %v4431_v27 = vld [vmem:[#allocation57_spill] sm:$0xff]  ;;  %v4433_v59 = vld [vmem:[#allocation58_spill] sm:$0xff] }
 0x3dc   :  { %v1163_v32 = vpop.permute.xlu1 %1162  ;;  %v1305_v61 = vmul.f32 %v4426_v48, %v3676_v47 }
 0x3dd   :  { %v1470_v51 = vadd.f32 %v1447_v0, %v1390_v60  ;;  %v1391_v36 = vadd.f32 %v1369_v23, %v1311_v39  ;;  %v1184_v52 = vadd.f32 %v1163_v32, %v3868_v41  ;;  %v4435_v60 = vld [vmem:[#allocation59_spill] sm:$0xff] }
 0x3df   :  { %v1471_v1 = vadd.f32 %v3857_v18, %v1391_v36  ;;  %v1264_v11 = vadd.f32 %v1243_v55, %v1184_v52  ;;  %v1526_v19 = vmul.f32 %v4425_v2, %v1470_v51 }
 0x3e0   :  { %v1245_v58 = vpop.permute.xlu1 %1244 }
 0x3e1   :  { %v1527_v46 = vmul.f32 %v4427_v4, %v1471_v1  ;;  %v1312_v0 = vadd.f32 %v1304_v5, %v1264_v11  ;;  %v1265_v23 = vadd.f32 %v1245_v58, %v1185_v15  ;;  %v1582_v41 = vadd.f32 %v4428_v28, %v1526_v19 }
 0x3e3   :  { %v1392_v10 = vadd.f32 %v3870_v3, %v1312_v0  ;;  %v1313_v34 = vadd.f32 %v1305_v61, %v1265_v23  ;;  %v1590_v42 = vmax.f32 %v1582_v41, 0.0  ;;  %v1583_v18 = vadd.f32 %v4429_v9, %v1527_v46 }
 0x3e4   :  { %v1167_v55 = vpop.permute.xlu1 %1166  ;;  %v1187_v3 = vadd.f32 %v1169_v49, %v3894_v13  ;;  %v4434_v13 = vld [vmem:[#allocation49_spill] sm:$0xff]  ;;  %v4441_v0 = vmov 1.0  }
 0x3e5   :  { %v1472_v22 = vadd.f32 %v1451_v6, %v1392_v10  ;;  %v1393_v56 = vadd.f32 %v1373_v29, %v1313_v34  ;;  %v1186_v45 = vadd.f32 %v1167_v55, %v3888_v7  ;;  %v3943_v63 = vsel %vm1598_vm11, %v1590_v42, 0.0  ;;  %v4432_v29 = vld [vmem:[#allocation34_spill] sm:$0xff]  ;;  %v1580_v4 = vpop.permute.xlu0 %1579 }
 0x3e6   :  { %1615 = vrot.lane.b32.xlu1 %v3943_v63, %s2806_s23  ;;  %v1591_v57 = vmax.f32 %v1583_v18, 0.0  ;;  %v1307_v7 = vmul.f32 %v4432_v29, %v3676_v47  ;;  %v1397_v42 = vadd.f32 %v3904_v37, %v3927_v35  ;;  %v4444_v37 = vld [vmem:[#allocation60_spill] sm:$0xff] }
 0x3e7   :  { %v1473_v24 = vadd.f32 %v3879_v20, %v1393_v56  ;;  %v1266_v38 = vadd.f32 %v1247_v40, %v1186_v45  ;;  %v1528_v6 = vmul.f32 %v4431_v27, %v1472_v22  ;;  %v4443_v45 = vld [vmem:[#allocation56_spill] sm:$0xff] }
 0x3e8   :  { %v1249_v43 = vpop.permute.xlu1 %1248  ;;  %v3955_v54 = vsel %vm1598_vm11, %v1591_v57, 0.0 }
 0x3e9   :  { %v1529_v62 = vmul.f32 %v4433_v59, %v1473_v24  ;;  %v1314_v53 = vadd.f32 %v1306_v44, %v1266_v38  ;;  %v1267_v30 = vadd.f32 %v1249_v43, %v1187_v3  ;;  %1617 = vrot.lane.b32.xlu0 %v3955_v54, %s2806_s23  ;;  %v1584_v49 = vadd.f32 %v4434_v13, %v1528_v6  ;;  %v1461_v41 = vpop.permute.xlu0 %1460 }
 0x3ea   :  { %1647 = vrot.lane.b32.xlu1 %v3943_v63, %s2807_s2  ;;  %v1477_v9 = vadd.f32 %v1461_v41, %v1397_v42 }
 0x3eb   :  { %v1394_v20 = vadd.f32 %v3912_v50, %v1314_v53  ;;  %v1315_v40 = vadd.f32 %v1307_v7, %v1267_v30  ;;  %v1592_v21 = vmax.f32 %v1584_v49, 0.0  ;;  %v1585_v39 = vadd.f32 %v4435_v60, %v1529_v62 }
 0x3ec   :  { %v1171_v32 = vpop.permute.xlu1 %1170  ;;  %v1533_v14 = vmul.f32 %v4443_v45, %v1477_v9 }
 0x3ed   :  { %v1474_v51 = vadd.f32 %v3914_v25, %v1394_v20  ;;  %v1395_v36 = vadd.f32 %v3890_v26, %v1315_v40  ;;  %1649 = vrot.lane.b32.xlu0 %v3955_v54, %s2807_s2  ;;  %v3970_v52 = vsel %vm1598_vm11, %v1592_v21, 0.0  ;;  %v1593_v8 = vmax.f32 %v1585_v39, 0.0  ;;  %v4436_v26 = vld [vmem:[#allocation55_spill] sm:$0xff] }
 0x3ee   :  { %1619 = vrot.lane.b32.xlu1 %v3970_v52, %s2806_s23  ;;  %v1188_v50 = vadd.f32 %v1171_v32, %v3907_v12  ;;  %v1308_v25 = vmul.f32 %v4436_v26, %v3676_v47  ;;  %v4437_v12 = vld [vmem:[#allocation51_spill] sm:$0xff]  ;;  %v4438_v47 = vmov 0.0  }
 0x3ef   :  { %v1475_v5 = vadd.f32 %v3896_v17, %v1395_v36  ;;  %v3977_v1 = vsel %vm1598_vm11, %v1593_v8, 0.0  ;;  %v1530_v2 = vmul.f32 %v3584_v33, %v1474_v51  ;;  %v2437_v58 = vsel %vm3030_vm7, 1.0, %v4438_v47  ;;  %v4440_v33 = vld [vmem:[#allocation53_spill] sm:$0xff] }
 0x3f0   :  { %v1251_v15 = vpop.permute.xlu1 %1250  ;;  %2641 = vmatprep.subr.msk.mxu1 %vm426_vm1, %v2437_v58  ;;  %2625 = vmatprep.subr.msk.mxu0 %vm426_vm1, %v2437_v58 }
 0x3f1   :  { %v1268_v11 = vadd.f32 %v1251_v15, %v1188_v50  ;;  %1621 = vrot.lane.b32.xlu0 %v3977_v1, %s2806_s23  ;;  %v1531_v48 = vmul.f32 %v4437_v12, %v1475_v5  ;;  %v1586_v17 = vadd.f32 %v3586_v16, %v1530_v2  ;;  %2642 = vmatpush3.msk.msra.mxu1 %vm426_vm1, %v2437_v58 }
 0x3f2   :  { %1679 = vrot.lane.b32.xlu1 %v3943_v63, %s2808_s0  ;;  %2626 = vmatpush3.msk.msra.mxu0 %vm426_vm1, %v2437_v58  ;;  %vm2061_vm1 = vcmask 97280  }
 0x3f3   :  { %v1316_v19 = vadd.f32 %v1308_v25, %v1268_v11  ;;  %v1587_v46 = vadd.f32 %v4440_v33, %v1531_v48  ;;  %v1594_v16 = vmax.f32 %v1586_v17, 0.0  ;;  %2643 = vmatprep.subr.msk.mxu1 %vm3048_vm8, %v4441_v0  ;;  %2627 = vmatprep.subr.msk.mxu0 %vm3048_vm8, %v4441_v0 }
 0x3f4   :  { %2644 = vmatpush3.msk.msra.mxu1 %vm3048_vm8, %v4441_v0  ;;  %2628 = vmatpush3.msk.msra.mxu0 %vm3048_vm8, %v4441_v0 }
 0x3f5   :  { %1681 = vrot.lane.b32.xlu0 %v3955_v54, %s2808_s0  ;;  %2657 = vmatprep.subr.mxu1 %v4438_v47  ;;  %v1595_v28 = vmax.f32 %v1587_v46, 0.0  ;;  %v4020_v34 = vsel %vm1598_vm11, %v1594_v16, 0.0  ;;  %v1396_v55 = vadd.f32 %v3916_v31, %v1316_v19  ;;  %v1589_v31 = vadd.f32 %v1580_v4, %v1533_v14 }
 0x3f6   :  { %1651 = vrot.lane.b32.xlu1 %v3970_v52, %s2807_s2 }
 0x3f7   :  { %v4027_v18 = vsel %vm1598_vm11, %v1595_v28, 0.0  ;;  %v1597_v3 = vmax.f32 %v1589_v31, 0.0 }
 0x3f9   :  { %1653 = vrot.lane.b32.xlu0 %v3977_v1, %s2807_s2  ;;  %v4052_v38 = vsel %vm1598_vm11, %v1597_v3, 0.0 }
 0x3fa   :  { %1711 = vrot.lane.b32.xlu1 %v3943_v63, %s2809_s3 }
 0x3fd   :  { %1713 = vrot.lane.b32.xlu0 %v3955_v54, %s2809_s3  ;;  %v1575_v10 = vpop.permute.xlu1 %1574 }
 0x3fe   :  { %1623 = vrot.lane.b32.xlu1 %v4020_v34, %s2806_s23 }
 0x401   :  { %1625 = vrot.lane.b32.xlu0 %v4027_v18, %s2806_s23  ;;  %v1459_v22 = vpop.permute.xlu1 %1458 }
 0x402   :  { %v1476_v56 = vadd.f32 %v1459_v22, %v1396_v55  ;;  %1683 = vrot.lane.b32.xlu1 %v3970_v52, %s2808_s0 }
 0x404   :  { %v1532_v35 = vmul.f32 %v4444_v37, %v1476_v56 }
 0x405   :  { %1685 = vrot.lane.b32.xlu0 %v3977_v1, %s2808_s0 }
 0x406   :  { %v1588_v44 = vadd.f32 %v1575_v10, %v1532_v35  ;;  %1655 = vrot.lane.b32.xlu1 %v4020_v34, %s2807_s2 }
 0x408   :  { %v1596_v57 = vmax.f32 %v1588_v44, 0.0 }
 0x409   :  { %1657 = vrot.lane.b32.xlu0 %v4027_v18, %s2807_s2 }
 0x40a   :  { %1715 = vrot.lane.b32.xlu1 %v3970_v52, %s2809_s3  ;;  %v4047_v24 = vsel %vm1598_vm11, %v1596_v57, 0.0 }
 0x40d   :  { %1717 = vrot.lane.b32.xlu0 %v3977_v1, %s2809_s3 }
 0x40e   :  { %1627 = vrot.lane.b32.xlu1 %v4047_v24, %s2806_s23 }
 0x411   :  { %1629 = vrot.lane.b32.xlu0 %v4052_v38, %s2806_s23 }
 0x412   :  { %1687 = vrot.lane.b32.xlu1 %v4020_v34, %s2808_s0 }
 0x415   :  { %1689 = vrot.lane.b32.xlu0 %v4027_v18, %s2808_s0 }
 0x416   :  { %1659 = vrot.lane.b32.xlu1 %v4047_v24, %s2807_s2 }
 0x419   :  { %1661 = vrot.lane.b32.xlu0 %v4052_v38, %s2807_s2 }
 0x41a   :  { %1719 = vrot.lane.b32.xlu1 %v4020_v34, %s2809_s3 }
 0x41d   :  { %1721 = vrot.lane.b32.xlu0 %v4027_v18, %s2809_s3 }
 0x41e   :  { %1691 = vrot.lane.b32.xlu1 %v4047_v24, %s2808_s0 }
 0x421   :  { %1693 = vrot.lane.b32.xlu0 %v4052_v38, %s2808_s0 }
 0x422   :  { %1723 = vrot.lane.b32.xlu1 %v4047_v24, %s2809_s3 }
 0x425   :  { %1725 = vrot.lane.b32.xlu0 %v4052_v38, %s2809_s3 }
 0x458   :  { %v1616_v27 = vpop.permute.xlu1 %1615 }
 0x459   :  { %v1639_v13 = vmax.f32 %v3943_v63, %v1616_v27 }
 0x45b   :  { %v1618_v6 = vpop.permute.xlu0 %1617 }
 0x45c   :  { %v1648_v29 = vpop.permute.xlu1 %1647  ;;  %v1640_v49 = vmax.f32 %v3955_v54, %v1618_v6 }
 0x45d   :  { %v1671_v40 = vmax.f32 %v1639_v13, %v1648_v29 }
 0x45f   :  { %v1650_v7 = vpop.permute.xlu0 %1649 }
 0x460   :  { %v1620_v43 = vpop.permute.xlu1 %1619  ;;  %v1672_v21 = vmax.f32 %v1640_v49, %v1650_v7 }
 0x461   :  { %v1641_v12 = vmax.f32 %v3970_v52, %v1620_v43 }
 0x463   :  { %v1622_v59 = vpop.permute.xlu0 %1621 }
 0x464   :  { %v1680_v62 = vpop.permute.xlu1 %1679  ;;  %v1642_v48 = vmax.f32 %v3977_v1, %v1622_v59 }
 0x465   :  { %v1703_v39 = vmax.f32 %v1671_v40, %v1680_v62 }
 0x467   :  { %v1682_v53 = vpop.permute.xlu0 %1681 }
 0x468   :  { %v1652_v30 = vpop.permute.xlu1 %1651  ;;  %v1704_v32 = vmax.f32 %v1672_v21, %v1682_v53 }
 0x469   :  { %v1673_v61 = vmax.f32 %v1641_v12, %v1652_v30 }
 0x46b   :  { %v1654_v20 = vpop.permute.xlu0 %1653 }
 0x46c   :  { %v1712_v60 = vpop.permute.xlu1 %1711  ;;  %v1674_v58 = vmax.f32 %v1642_v48, %v1654_v20 }
 0x46d   :  { %v1735_v36 = vmax.f32 %v1703_v39, %v1712_v60 }
 0x46f   :  { %v1714_v51 = vpop.permute.xlu0 %1713 }
 0x470   :  { %v1736_v8 = vmax.f32 %v1704_v32, %v1714_v51  ;;  %v1624_v50 = vpop.permute.xlu1 %1623 }
 0x471   :  { %v1643_v45 = vmax.f32 %v4020_v34, %v1624_v50 }
 0x472   :  { %v1743_v5 = vpack.c.bf16 %v1736_v8, %v1735_v36 }
 0x473   :  { %v1626_v15 = vpop.permute.xlu0 %1625 }
 0x474   :  { %v1747_v26 = vunpack.c.l.bf16 %v1743_v5  ;;  %v1748_v25 = vunpack.c.h.bf16 %v1743_v5  ;;  %v1684_v11 = vpop.permute.xlu1 %1683  ;;  %v1644_v14 = vmax.f32 %v4027_v18, %v1626_v15 }
 0x475   :  { %v1705_v33 = vmax.f32 %v1673_v61, %v1684_v11 }
 0x476   :  { %v1755_v2 = vsub.f32 %v1735_v36, %v1747_v26  ;;  %v1756_v19 = vsub.f32 %v1736_v8, %v1748_v25  ;;  %2645 = vmatprep.mubr.msk.f32.mxu1 %vm1598_vm11, %v1747_v26 }
 0x477   :  { %v1686_v63 = vpop.permute.xlu0 %1685  ;;  %2646 = vmatmul.mubr.msk.f32.vlgmr.msra.gmra.mxu1 %vm1598_vm11, %v1748_v25 }
 0x478   :  { %2629 = vmatprep.mubr.msk.f32.mxu0 %vm1598_vm11, %v1755_v2  ;;  %v1656_v54 = vpop.permute.xlu1 %1655  ;;  %v1706_v46 = vmax.f32 %v1674_v58, %v1686_v63  ;;  %v2068_v63 = vld [vmem:[%s4304_s7 + $0x18] sm:$0xff] }
 0x479   :  { %2630 = vmatmul.mubr.msk.f32.vlgmr.msra.gmra.mxu0 %vm1598_vm11, %v1756_v19  ;;  %v1675_v35 = vmax.f32 %v1643_v45, %v1656_v54  ;;  %v2069_v19 = vld [vmem:[%s4304_s7 + $0x20] sm:$0xff] }
 0x47a   :  { %2120 = vmatprep.subr.mxu0 %v2069_v19  ;;  %v2275_v19 = vld [vmem:[%s4305_s9 + $0x138] sm:$0xff] }
 0x47b   :  { %v1658_v17 = vpop.permute.xlu0 %1657  ;;  %2121 = vmatpush1.msra.mxu0 %v2068_v63  ;;  %v2243_v63 = vld [vmem:[%s4305_s9 + $0x38] sm:$0xff] }
 0x47c   :  { %v1716_v4 = vpop.permute.xlu1 %1715  ;;  %v1676_v44 = vmax.f32 %v1644_v14, %v1658_v17 }
 0x47d   :  { %v1737_v0 = vmax.f32 %v1705_v33, %v1716_v4  ;;  %v2066_v4 = vld [vmem:[%s4304_s7 + $0x8] sm:$0xff]  ;;  %v2065_v33 = vld [vmem:[%s4304_s7] sm:$0xff] }
 0x47e   :  { %2122 = vmatprep.subr.mxu0 %v2066_v4  ;;  %v2256_v4 = vld [vmem:[%s4305_s9 + $0xa0] sm:$0xff] }
 0x47f   :  { %v1718_v16 = vpop.permute.xlu0 %1717  ;;  %2123 = vmatpush1.msra.mxu0 %v2065_v33  ;;  %v2272_v33 = vld [vmem:[%s4305_s9 + $0x120] sm:$0xff] }
 0x480   :  { %v1738_v23 = vmax.f32 %v1706_v46, %v1718_v16  ;;  %v1628_v28 = vpop.permute.xlu1 %1627  ;;  %v2070_v46 = vld [vmem:[%s4304_s7 + $0x28] sm:$0xff] }
 0x481   :  { %v1645_v43 = vmax.f32 %v4047_v24, %v1628_v28  ;;  %2658 = vmatpush3.msra.mxu1 %v2070_v46  ;;  %v2067_v28 = vld [vmem:[%s4304_s7 + $0x10] sm:$0xff]  ;;  %s2826_s7 = smov 14   ;;  %v2240_v46 = vld [vmem:[%s4305_s9 + $0x20] sm:$0xff] }
 0x482   :  { %v1744_v41 = vpack.c.bf16 %v1738_v23, %v1737_v0  ;;  %2659 = vmatprep.subr.mxu1 %v4438_v47 }
 0x483   :  { %v1630_v10 = vpop.permute.xlu0 %1629  ;;  %2660 = vmatpush3.msra.mxu1 %v2067_v28  ;;  %v2239_v28 = vld [vmem:[%s4305_s9 + $0x18] sm:$0xff] }
 0x484   :  { %v1749_v42 = vunpack.c.l.bf16 %v1744_v41  ;;  %v1750_v9 = vunpack.c.h.bf16 %v1744_v41  ;;  %v1688_v55 = vpop.permute.xlu1 %1687  ;;  %v1646_v59 = vmax.f32 %v4052_v38, %v1630_v10  ;;  %2664 = vmatprep.subr.mxu1 %v4438_v47 }
 0x485   :  { %v1707_v57 = vmax.f32 %v1675_v35, %v1688_v55 }
 0x486   :  { %v1757_v22 = vsub.f32 %v1737_v0, %v1749_v42  ;;  %v1758_v56 = vsub.f32 %v1738_v23, %v1750_v9  ;;  %2648 = vmatprep.mubr.msk.f32.mxu1 %vm1598_vm11, %v1749_v42 }
 0x487   :  { %v1690_v52 = vpop.permute.xlu0 %1689  ;;  %2649 = vmatmul.mubr.msk.f32.gmra.mxu1 %vm1598_vm11, %v1750_v9  ;;  %v2267_v9 = vld [vmem:[%s4305_s9 + $0xf8] sm:$0xff] }
 0x488   :  { %2632 = vmatprep.mubr.msk.f32.mxu0 %vm1598_vm11, %v1757_v22  ;;  %v1660_v1 = vpop.permute.xlu1 %1659  ;;  %v1708_v3 = vmax.f32 %v1676_v44, %v1690_v52  ;;  %2533 = vmatprep.subr.mxu0 %v2267_v9  ;;  %v2253_v9 = vld [vmem:[%s4305_s9 + $0x88] sm:$0xff] }
 0x489   :  { %2633 = vmatmul.mubr.msk.f32.gmra.mxu0 %vm1598_vm11, %v1758_v56  ;;  %v1677_v30 = vmax.f32 %v1645_v43, %v1660_v1 }
 0x48b   :  { %v1662_v37 = vpop.permute.xlu0 %1661 }
 0x48c   :  { %v1720_v31 = vpop.permute.xlu1 %1719  ;;  %v1678_v34 = vmax.f32 %v1646_v59, %v1662_v37 }
 0x48d   :  { %v1739_v6 = vmax.f32 %v1707_v57, %v1720_v31 }
 0x48f   :  { %v1722_v27 = vpop.permute.xlu0 %1721 }
 0x490   :  { %v1740_v29 = vmax.f32 %v1708_v3, %v1722_v27  ;;  %v1692_v7 = vpop.permute.xlu1 %1691 }
 0x491   :  { %v1709_v21 = vmax.f32 %v1677_v30, %v1692_v7 }
 0x492   :  { %v1745_v62 = vpack.c.bf16 %v1740_v29, %v1739_v6 }
 0x493   :  { %v1694_v53 = vpop.permute.xlu0 %1693 }
 0x494   :  { %v1751_v13 = vunpack.c.l.bf16 %v1745_v62  ;;  %v1752_v18 = vunpack.c.h.bf16 %v1745_v62  ;;  %v1724_v49 = vpop.permute.xlu1 %1723  ;;  %v1710_v60 = vmax.f32 %v1678_v34, %v1694_v53  ;;  %v2283_v62 = vld [vmem:[%s4305_s9 + $0x178] sm:$0xff]  ;;  %v2266_v34 = vld [vmem:[%s4305_s9 + $0xf0] sm:$0xff] }
 0x495   :  { %v1741_v32 = vmax.f32 %v1709_v21, %v1724_v49  ;;  %v2251_v53 = vld [vmem:[%s4305_s9 + $0x78] sm:$0xff]  ;;  %v2265_v49 = vld [vmem:[%s4305_s9 + $0xe8] sm:$0xff]  ;;  %v2264_v21 = vld [vmem:[%s4305_s9 + $0xe0] sm:$0xff] }
 0x496   :  { %v1759_v20 = vsub.f32 %v1739_v6, %v1751_v13  ;;  %v1760_v40 = vsub.f32 %v1740_v29, %v1752_v18  ;;  %2651 = vmatprep.mubr.msk.f32.mxu1 %vm1598_vm11, %v1751_v13  ;;  %v2282_v13 = vld [vmem:[%s4305_s9 + $0x170] sm:$0xff] }
 0x497   :  { %v1726_v39 = vpop.permute.xlu0 %1725  ;;  %2652 = vmatmul.mubr.msk.f32.gmra.mxu1 %vm1598_vm11, %v1752_v18  ;;  %v2250_v18 = vld [vmem:[%s4305_s9 + $0x70] sm:$0xff] }
 0x498   :  { %v1742_v24 = vmax.f32 %v1710_v60, %v1726_v39  ;;  %2635 = vmatprep.mubr.msk.f32.mxu0 %vm1598_vm11, %v1759_v20  ;;  %v2281_v20 = vld [vmem:[%s4305_s9 + $0x168] sm:$0xff]  ;;  %v2280_v60 = vld [vmem:[%s4305_s9 + $0x160] sm:$0xff] }
 0x499   :  { %2636 = vmatmul.mubr.msk.f32.gmra.mxu0 %vm1598_vm11, %v1760_v40  ;;  %v2249_v40 = vld [vmem:[%s4305_s9 + $0x68] sm:$0xff]  ;;  %v2248_v39 = vld [vmem:[%s4305_s9 + $0x60] sm:$0xff] }
 0x49a   :  { %v1746_v38 = vpack.c.bf16 %v1742_v24, %v1741_v32 }
 0x49c   :  { %v1753_v51 = vunpack.c.l.bf16 %v1746_v38  ;;  %v1754_v36 = vunpack.c.h.bf16 %v1746_v38  ;;  %v2247_v38 = vld [vmem:[%s4305_s9 + $0x58] sm:$0xff] }
 0x49e   :  { %v1761_v8 = vsub.f32 %v1741_v32, %v1753_v51  ;;  %v1762_v50 = vsub.f32 %v1742_v24, %v1754_v36  ;;  %2654 = vmatprep.mubr.msk.f32.mxu1 %vm1598_vm11, %v1753_v51  ;;  %v2263_v32 = vld [vmem:[%s4305_s9 + $0xd8] sm:$0xff]  ;;  %v2262_v51 = vld [vmem:[%s4305_s9 + $0xd0] sm:$0xff] }
 0x49f   :  { %2655 = vmatmul.mubr.msk.f32.gmra.mxu1 %vm1598_vm11, %v1754_v36  ;;  %v2279_v24 = vld [vmem:[%s4305_s9 + $0x158] sm:$0xff]  ;;  %v2278_v36 = vld [vmem:[%s4305_s9 + $0x150] sm:$0xff] }
 0x4a0   :  { %2638 = vmatprep.mubr.msk.f32.mxu0 %vm1598_vm11, %v1761_v8  ;;  %2661 = vmatprep.mubr.msk.f32.mxu1 %vm2823_vm12, %v4438_v47  ;;  %v2246_v8 = vld [vmem:[%s4305_s9 + $0x50] sm:$0xff] }
 0x4a1   :  { %2639 = vmatmul.mubr.msk.f32.gmra.mxu0 %vm1598_vm11, %v1762_v50  ;;  %v2261_v50 = vld [vmem:[%s4305_s9 + $0xc8] sm:$0xff] }
 0x4a2   :  { %2156 = vmatprep.mubr.f32.mxu0 %v4438_v47 }
 0x537   :  { %v2647_v5 = vpop.f32.mrf.mxu1 }
 0x539   :  { %v2631_v15 = vpop.f32.mrf.mxu0  ;;  %v1985_v25 = vpop.f32.mrf.mxu1 }
 0x53a   :  { %v1991_v26 = vadd.f32 %v2647_v5, %v2631_v15  ;;  %v2277_v5 = vld [vmem:[%s4305_s9 + $0x148] sm:$0xff] }
 0x53b   :  { %v1856_v11 = vpop.f32.mrf.mxu0  ;;  %v2245_v15 = vld [vmem:[%s4305_s9 + $0x48] sm:$0xff] }
 0x53c   :  { %v1986_v2 = vadd.f32 %v1985_v25, %v1856_v11  ;;  %2025 = vrot.lane.b32.xlu1 %v1991_v26, %s2820_s6  ;;  %v2260_v26 = vld [vmem:[%s4305_s9 + $0xc0] sm:$0xff] }
 0x53d   :  { %v2276_v25 = vld [vmem:[%s4305_s9 + $0x140] sm:$0xff] }
 0x53e   :  { %v2244_v11 = vld [vmem:[%s4305_s9 + $0x40] sm:$0xff] }
 0x547   :  { %v2650_v54 = vpop.f32.mrf.mxu1 }
 0x549   :  { %v2634_v12 = vpop.f32.mrf.mxu0  ;;  %v1995_v17 = vpop.f32.mrf.mxu1 }
 0x54a   :  { %v2001_v48 = vadd.f32 %v2650_v54, %v2634_v12  ;;  %v2258_v54 = vld [vmem:[%s4305_s9 + $0xb0] sm:$0xff] }
 0x54b   :  { %v1866_v61 = vpop.f32.mrf.mxu0  ;;  %v2274_v12 = vld [vmem:[%s4305_s9 + $0x130] sm:$0xff] }
 0x54c   :  { %v1996_v58 = vadd.f32 %v1995_v17, %v1866_v61  ;;  %2033 = vrot.lane.b32.xlu1 %v2001_v48, %s2821_s12  ;;  %v2242_v48 = vld [vmem:[%s4305_s9 + $0x30] sm:$0xff]  ;;  %v2257_v17 = vld [vmem:[%s4305_s9 + $0xa8] sm:$0xff] }
 0x54d   :  { %v2273_v61 = vld [vmem:[%s4305_s9 + $0x128] sm:$0xff] }
 0x54e   :  { %2029 = vrot.lane.b32.xlu0 %v1996_v58, %s2822_s13  ;;  %v2241_v58 = vld [vmem:[%s4305_s9 + $0x28] sm:$0xff] }
 0x557   :  { %v2653_v16 = vpop.f32.mrf.mxu1 }
 0x559   :  { %v2637_v0 = vpop.f32.mrf.mxu0  ;;  %v2005_v41 = vpop.f32.mrf.mxu1 }
 0x55a   :  { %v2011_v23 = vadd.f32 %v2653_v16, %v2637_v0  ;;  %v2271_v16 = vld [vmem:[%s4305_s9 + $0x118] sm:$0xff] }
 0x55b   :  { %v1876_v10 = vpop.f32.mrf.mxu0  ;;  %v2255_v0 = vld [vmem:[%s4305_s9 + $0x98] sm:$0xff] }
 0x55c   :  { %v2006_v42 = vadd.f32 %v2005_v41, %v1876_v10  ;;  %2041 = vrot.lane.b32.xlu1 %v2011_v23, %s2824_s21  ;;  %v2270_v23 = vld [vmem:[%s4305_s9 + $0x110] sm:$0xff]  ;;  %v2269_v10 = vld [vmem:[%s4305_s9 + $0x108] sm:$0xff] }
 0x55d   :  { %v2254_v41 = vld [vmem:[%s4305_s9 + $0x90] sm:$0xff] }
 0x55e   :  { %2037 = vrot.lane.b32.xlu0 %v2006_v42, %s2825_s25  ;;  %v2238_v42 = vld [vmem:[%s4305_s9 + $0x10] sm:$0xff] }
 0x55f   :  { %v2656_v55 = vpop.f32.mrf.mxu1 }
 0x561   :  { %v2640_v22 = vpop.f32.mrf.mxu0  ;;  %v2015_v52 = vpop.f32.mrf.mxu1 }
 0x562   :  { %v2021_v56 = vadd.f32 %v2656_v55, %v2640_v22  ;;  %v2268_v55 = vld [vmem:[%s4305_s9 + $0x100] sm:$0xff]  ;;  %v2237_v22 = vld [vmem:[%s4305_s9 + $0x8] sm:$0xff] }
 0x563   :  { %v1886_v1 = vpop.f32.mrf.mxu0 }
 0x564   :  { %v2016_v45 = vadd.f32 %v2015_v52, %v1886_v1  ;;  %2049 = vrot.lane.b32.xlu1 %v2021_v56, %s2826_s7  ;;  %v2252_v56 = vld [vmem:[%s4305_s9 + $0x80] sm:$0xff] }
 0x565   :  { %v2236_v52 = vld [vmem:[%s4305_s9] sm:$0xff] }
 0x566   :  { %2045 = vrot.lane.b32.xlu0 %v2016_v45, %s2827_s26  ;;  %v4445_v1 = vld [vmem:[#allocation2_spill] sm:$0xff] }
 0x567   :  { %v2083_v45 = vsub.s32 2, %v4445_v1 }
 0x5ae   :  { %v2026_v14 = vpop.permute.xlu1 %2025 }
 0x5af   :  { %v2053_v35 = vsel %vm2052_vm13, %v1986_v2, %v2026_v14  ;;  %v2259_v2 = vld [vmem:[%s4305_s9 + $0xb8] sm:$0xff]  ;;  %v2071_v14 = vld [vmem:[%s4306_s8] sm:$0x7] }
 0x5be   :  { %v2034_v44 = vpop.permute.xlu1 %2033 }
 0x5c0   :  { %v2030_v37 = vpop.permute.xlu0 %2029 }
 0x5c1   :  { %v2055_v31 = vsel %vm2054_vm14, %v2053_v35, %v2030_v37  ;;  %v2079_v37 = vsub.s32 1, %v4445_v1  ;;  %v2084_v35 = vrot.slane %v2071_v14, %v2083_v45 }
 0x5c2   :  { %v2057_v3 = vsel %vm2056_vm15, %v2055_v31, %v2034_v44 }
 0x5c3   :  { %v2080_v31 = vrot.slane %v2071_v14, %v2079_v37 }
 0x5ce   :  { %v2042_v27 = vpop.permute.xlu1 %2041 }
 0x5d0   :  { %v2038_v57 = vpop.permute.xlu0 %2037 }
 0x5d1   :  { %v2059_v6 = vsel %vm2058_vm0, %v2057_v3, %v2038_v57 }
 0x5d2   :  { %v2060_v7 = vsel %vm1598_vm11, %v2059_v6, %v2042_v27 }
 0x5d6   :  { %v2050_v43 = vpop.permute.xlu1 %2049 }
 0x5d8   :  { %v2046_v29 = vpop.permute.xlu0 %2045 }
 0x5d9   :  { %v2062_v59 = vsel %vm2061_vm1, %v2060_v7, %v2046_v29 }
 0x5da   :  { %v2064_v30 = vsel %vm2063_vm2, %v2062_v59, %v2050_v43 }
 0x5db   :  { %2485 = vmatmul.mubr.msk.f32.vlgmr.msra.gmra.mxu0 %vm2088_vm3, %v2064_v30  ;;  %2662 = vmatmul.mubr.msk.f32.vlgmr.msra.gmra.mxu1 %vm2088_vm3, %v2064_v30 }
 0x5dc   :  { %2665 = vmatpush3.msra.mxu1 %v2283_v62  ;;  %2534 = vmatpush3.msra.mxu0 %v2251_v53 }
 0x5dd   :  { %2666 = vmatprep.subr.mxu1 %v4438_v47  ;;  %2535 = vmatprep.subr.mxu0 %v2266_v34 }
 0x5de   :  { %2667 = vmatpush3.msra.mxu1 %v2282_v13  ;;  %2536 = vmatpush3.msra.mxu0 %v2250_v18  ;;  %v2487_v18 = vld [vmem:[%s4307_s10] ss:$0 sm:$0xff] }
 0x5df   :  { %2668 = vmatprep.subr.mxu1 %v4438_v47  ;;  %2537 = vmatprep.subr.mxu0 %v2265_v49 }
 0x5e0   :  { %2669 = vmatpush3.msra.mxu1 %v2281_v20  ;;  %2538 = vmatpush3.msra.mxu0 %v2249_v40 }
 0x5e1   :  { %2670 = vmatprep.subr.mxu1 %v4438_v47  ;;  %2539 = vmatprep.subr.mxu0 %v2264_v21 }
 0x5e2   :  { %2671 = vmatpush3.msra.mxu1 %v2280_v60  ;;  %2540 = vmatpush3.msra.mxu0 %v2248_v39 }
 0x5e3   :  { %2672 = vmatprep.subr.mxu1 %v4438_v47  ;;  %2541 = vmatprep.subr.mxu0 %v2263_v32 }
 0x5e4   :  { %2673 = vmatpush3.msra.mxu1 %v2279_v24  ;;  %2542 = vmatpush3.msra.mxu0 %v2247_v38 }
 0x5e5   :  { %2674 = vmatprep.subr.mxu1 %v4438_v47  ;;  %2543 = vmatprep.subr.mxu0 %v2262_v51 }
 0x5e6   :  { %2675 = vmatpush3.msra.mxu1 %v2278_v36  ;;  %2544 = vmatpush3.msra.mxu0 %v2246_v8 }
 0x5e7   :  { %2676 = vmatprep.subr.mxu1 %v4438_v47  ;;  %2545 = vmatprep.subr.mxu0 %v2261_v50 }
 0x5e8   :  { %2677 = vmatpush3.msra.mxu1 %v2277_v5  ;;  %2546 = vmatpush3.msra.mxu0 %v2245_v15 }
 0x5e9   :  { %2678 = vmatprep.subr.mxu1 %v4438_v47  ;;  %2547 = vmatprep.subr.mxu0 %v2260_v26 }
 0x5ea   :  { %2679 = vmatpush3.msra.mxu1 %v2276_v25  ;;  %2548 = vmatpush3.msra.mxu0 %v2244_v11 }
 0x5eb   :  { %2680 = vmatprep.subr.mxu1 %v4438_v47  ;;  %2549 = vmatprep.subr.mxu0 %v2259_v2 }
 0x5ec   :  { %2681 = vmatpush3.msra.mxu1 %v2275_v19  ;;  %2550 = vmatpush3.msra.mxu0 %v2243_v63 }
 0x5ed   :  { %2682 = vmatprep.subr.mxu1 %v4438_v47  ;;  %2551 = vmatprep.subr.mxu0 %v2258_v54 }
 0x5ee   :  { %2683 = vmatpush3.msra.mxu1 %v2274_v12  ;;  %2552 = vmatpush3.msra.mxu0 %v2242_v48 }
 0x5ef   :  { %2684 = vmatprep.subr.mxu1 %v4438_v47  ;;  %2553 = vmatprep.subr.mxu0 %v2257_v17 }
 0x5f0   :  { %2685 = vmatpush3.msra.mxu1 %v2273_v61  ;;  %2554 = vmatpush3.msra.mxu0 %v2241_v58 }
 0x5f1   :  { %2686 = vmatprep.subr.mxu1 %v4438_v47  ;;  %2555 = vmatprep.subr.mxu0 %v2256_v4 }
 0x5f2   :  { %2687 = vmatpush3.msra.mxu1 %v2272_v33  ;;  %2556 = vmatpush3.msra.mxu0 %v2240_v46 }
 0x5f3   :  { %2688 = vmatprep.subr.mxu1 %v4438_v47  ;;  %2696 = vmatprep.mubr.msk.f32.mxu1 %vm2823_vm12, %v4438_v47 }
 0x5f4   :  { %2689 = vmatpush3.msra.mxu1 %v2271_v16  ;;  %2557 = vmatprep.subr.mxu0 %v2255_v0 }
 0x5f5   :  { %2690 = vmatprep.subr.mxu1 %v4438_v47  ;;  %2558 = vmatpush3.msra.mxu0 %v2239_v28 }
 0x5f6   :  { %2691 = vmatpush3.msra.mxu1 %v2270_v23  ;;  %2559 = vmatprep.subr.mxu0 %v2254_v41 }
 0x5f7   :  { %2692 = vmatprep.subr.mxu1 %v4438_v47  ;;  %2560 = vmatpush3.msra.mxu0 %v2238_v42 }
 0x5f8   :  { %2693 = vmatpush3.msra.mxu1 %v2269_v10  ;;  %2561 = vmatprep.subr.mxu0 %v2253_v9 }
 0x5f9   :  { %2694 = vmatprep.subr.mxu1 %v4438_v47  ;;  %2562 = vmatpush3.msra.mxu0 %v2237_v22  ;;  %v2075_v47 = vsub.s32 0, %v4445_v1 }
 0x5fa   :  { %2695 = vmatpush3.msra.mxu1 %v2268_v55  ;;  %2563 = vmatprep.subr.mxu0 %v2252_v56 }
 0x5fb   :  { %2564 = vmatpush3.msra.mxu0 %v2236_v52  ;;  %v2076_v44 = vrot.slane %v2071_v14, %v2075_v47 }
 0x69b   :  { %v2158_v57 = vpop.f32.mrf.mxu0  ;;  %v2229_v3 = vpop.f32.mrf.mxu1 }
 0x69c   :  { %v2230_v27 = vadd.f32 %v2229_v3, %v2084_v35  ;;  %v2159_v6 = vadd.f32 %v2158_v57, %v2076_v44 }
 0x69d   :  { %v2160_v29 = vpop.f32.mrf.mxu0  ;;  %v2663_v7 = vpop.f32.mrf.mxu1 }
 0x69e   :  { %v2235_v43 = vmax.f32 %v2230_v27, 0.0  ;;  %v2161_v59 = vadd.f32 %v2160_v29, %v2080_v31  ;;  %v2233_v53 = vmax.f32 %v2159_v6, 0.0 }
 0x6a0   :  { %v2234_v62 = vmax.f32 %v2161_v59, 0.0  ;;  %2697 = vmatmul.mubr.f32.vlgmr.msra.gmra.mxu1 %v2235_v43 }
 0x6a2   :  { %2355 = vmatprep.mubr.f32.mxu0 %v2234_v62 }
 0x6a3   :  { %2356 = vmatmul.mubr.f32.vlgmr.msra.gmra.mxu0 %v2233_v53 }
 0x760   :  { %v2427_v30 = vpop.f32.mrf.mxu1 }
 0x762   :  { %v2698_v34 = vpop.f32.mrf.mxu1 }
 0x763   :  { %v2565_v13 = vpop.f32.mrf.mxu0 }
 0x765   :  { %v2566_v49 = vpop.f32.mrf.mxu0 }
 0x766   :  { %v2567_v20 = vadd.f32 %v2566_v49, %v2565_v13 }
 0x768   :  { %v2358_v40 = vadd.f32 %v2567_v20, %v2487_v18 }
 0x76a   :  { %v2428_v21 = vadd.f32 %v2427_v30, %v2358_v40 }
 0x76c   :  { %2431 = vst [vmem:[%s4308_s11] sm:$0xff] %v2428_v21 }

</bundles_post_ra>
